<compile_context>
chip_gen: v7x
topology: tpu7x:2x2x1
jax: 0.10.0
libtpu: 0.0.40
codegen_flags: <defaults>
</compile_context>

<pallas_src>
import random

import jax
import jax.numpy as jnp
from jax import lax
from jax.experimental import pallas as pl
from jax.experimental.pallas import tpu as pltpu

HIDDEN = 100   # fixed in Seq2Seq.__init__ (self.hidden_dim = 100)
LANE = 128     # TPU lane width (pad H / E / V_out to this)


# ---------------------------------------------------------------------------
# small host-side helpers (padding to TPU-friendly shapes)
# ---------------------------------------------------------------------------
def _round_up(n, m):
    return (n + m - 1) // m * m


def _pad_axis(a, target, axis, value=0.0):
    if a.shape[axis] == target:
        return a
    pad = [(0, 0)] * a.ndim
    pad[axis] = (0, target - a.shape[axis])
    return jnp.pad(a, pad, constant_values=value)


def _pad_gates(w, hp):
    """[..., 4*H] (PyTorch i,f,g,o gate order) -> [..., 4*hp], each gate zero-padded
    so padded hidden lanes stay inert (sigmoid(0)=.5 gates on a 0 cell keep it 0)."""
    lead = w.shape[:-1]
    h = w.shape[-1] // 4
    w = w.reshape(*lead, 4, h)
    w = _pad_axis(w, hp, axis=w.ndim - 1)
    return w.reshape(*lead, 4 * hp)


# ---------------------------------------------------------------------------
# Encoder: single pallas_call; hoisted input matmul + serial h @ W_hh recurrence
# ---------------------------------------------------------------------------
def encoder_kernel(x_ref, wih_ref, whh_ref, b_ref, hN_ref, cN_ref, gx_sc):
    B, Hp = hN_ref.shape
    S = x_ref.shape[0] // B

    # Hoisted input-side matmul: one MXU matmul with M = S*B (off the critical path).
    gx_sc[...] = (jnp.dot(x_ref[...], wih_ref[...], preferred_element_type=jnp.float32)
                  + b_ref[...])
    whh = whh_ref[...]

    h = jnp.zeros((B, Hp), jnp.float32)
    c = jnp.zeros((B, Hp), jnp.float32)
    # Short, static trip count -> fully unrolled straight-line recurrence.
    for t in range(S):
        gates = gx_sc[t * B:(t + 1) * B, :] + jnp.dot(
            h, whh, preferred_element_type=jnp.float32)
        i = jax.nn.sigmoid(gates[:, 0 * Hp:1 * Hp])   # lane-aligned gate slices
        f = jax.nn.sigmoid(gates[:, 1 * Hp:2 * Hp])
        g = jnp.tanh(gates[:, 2 * Hp:3 * Hp])
        o = jax.nn.sigmoid(gates[:, 3 * Hp:4 * Hp])
        c = f * c + i * g
        h = o * jnp.tanh(c)

    hN_ref[...] = h   # written once, at the end
    cN_ref[...] = c


def run_encoder(x_flat_tm, batch, wih, whh, b):
    """x_flat_tm: [S*B, Ep] time-major flattened embedded input -> final (h, c)."""
    SB, _ = x_flat_tm.shape
    Hp = whh.shape[0]
    return pl.pallas_call(
        encoder_kernel,
        out_shape=(jax.ShapeDtypeStruct((batch, Hp), jnp.float32),
                   jax.ShapeDtypeStruct((batch, Hp), jnp.float32)),
        scratch_shapes=[pltpu.VMEM((SB, 4 * Hp), jnp.float32)],
    )(x_flat_tm, wih, whh, b)


# ---------------------------------------------------------------------------
# Decoder: ONE fused kernel over all decode steps (grid = out_len - 1)
# ---------------------------------------------------------------------------
def decoder_kernel(force_ref, tgt_ref, emb_ref, wf_ref, b_ref, wout_ref, bout_ref,
                   h0_ref, c0_ref, logp_ref, h_sc, c_sc, xg_sc):
    t = pl.program_id(0)
    B, Hp = h_sc.shape
    Vp = bout_ref.shape[-1]

    @pl.when(t == 0)
    def _():
        h_sc[...] = h0_ref[...]          # decoder_hidden = encoder_hidden
        c_sc[...] = c0_ref[...]
        xg_sc[...] = jnp.zeros_like(xg_sc)

    # Input embedding for this step: teacher-forced -> embedding of target[:, t]
    # (per-step block); otherwise the greedy embedding produced at the previous step.
    use_tgt = jnp.logical_or(t == 0, force_ref[t] != 0)
    x = jnp.where(use_tgt, tgt_ref[...], xg_sc[...])              # [B, Ep]

    # Fused LSTM cell: single MXU matmul on concat([x, h]).
    xh = jnp.concatenate([x, h_sc[...]], axis=-1)                 # [B, Ep + Hp]
    gates = jnp.dot(xh, wf_ref[...], preferred_element_type=jnp.float32) + b_ref[...]
    i = jax.nn.sigmoid(gates[:, 0 * Hp:1 * Hp])
    f = jax.nn.sigmoid(gates[:, 1 * Hp:2 * Hp])
    g = jnp.tanh(gates[:, 2 * Hp:3 * Hp])
    o = jax.nn.sigmoid(gates[:, 3 * Hp:4 * Hp])
    c_new = f * c_sc[...] + i * g
    h_new = o * jnp.tanh(c_new)
    h_sc[...] = h_new
    c_sc[...] = c_new

    # Output projection + numerically stable log-softmax.  Padded vocab lanes carry
    # bias -1e9 so they never win the max and vanish from the partition function.
    logits = (jnp.dot(h_new, wout_ref[...], preferred_element_type=jnp.float32)
              + bout_ref[...])
    m = jnp.max(logits, axis=-1, keepdims=True)
    z = logits - m
    lse = jnp.log(jnp.sum(jnp.exp(z), axis=-1, keepdims=True))
    logp = z - lse
    logp_ref[...] = logp

    # Greedy top-1 feedback for the next step: first index attaining the row max,
    # turned into a one-hot and embedded with one MXU matmul (in-kernel "gather").
    pmax = jnp.max(logp, axis=-1, keepdims=True)
    iota = lax.broadcasted_iota(jnp.float32, (B, Vp), 1)
    topi = jnp.min(jnp.where(logp == pmax, iota, float(Vp)), axis=-1, keepdims=True)
    onehot = (iota == topi).astype(jnp.float32)
    xg_sc[...] = jnp.dot(onehot, emb_ref[...], preferred_element_type=jnp.float32)


def run_decoder(force, tgt_emb_tm, h0, c0, dec_emb, w_fused, b, wout, bout):
    T, B, Ep = tgt_emb_tm.shape
    Hp = h0.shape[-1]
    Vp = wout.shape[-1]
    nsteps = T - 1
    grid_spec = pltpu.PrefetchScalarGridSpec(
        num_scalar_prefetch=1,                                   # teacher-forcing mask (SMEM)
        grid=(nsteps,),
        in_specs=[
            pl.BlockSpec((None, B, Ep), lambda t, f: (t, 0, 0)),   # target embeddings (per step)
            pl.BlockSpec((Vp, Ep), lambda t, f: (0, 0)),           # decoder embedding table (resident)
            pl.BlockSpec((Ep + Hp, 4 * Hp), lambda t, f: (0, 0)),  # fused [W_ih; W_hh] (resident)
            pl.BlockSpec((1, 4 * Hp), lambda t, f: (0, 0)),        # bias
            pl.BlockSpec((Hp, Vp), lambda t, f: (0, 0)),           # output projection (resident)
            pl.BlockSpec((1, Vp), lambda t, f: (0, 0)),            # output bias (-1e9 on pad lanes)
            pl.BlockSpec((B, Hp), lambda t, f: (0, 0)),            # initial h
            pl.BlockSpec((B, Hp), lambda t, f: (0, 0)),            # initial c
        ],
        out_specs=pl.BlockSpec((None, B, Vp), lambda t, f: (t, 0, 0)),
        scratch_shapes=[pltpu.VMEM((B, Hp), jnp.float32),   # h carry
                        pltpu.VMEM((B, Hp), jnp.float32),   # c carry
                        pltpu.VMEM((B, Ep), jnp.float32)],  # greedy feedback embedding
    )
    return pl.pallas_call(
        decoder_kernel,
        out_shape=jax.ShapeDtypeStruct((nsteps, B, Vp), jnp.float32),
        grid_spec=grid_spec,
        compiler_params=pltpu.CompilerParams(dimension_semantics=("arbitrary",)),
    )(force, tgt_emb_tm, dec_emb, w_fused, b, wout, bout, h0, c0)


# ---------------------------------------------------------------------------
# Parameter init (deterministic, synthetic) at the logical sizes, then padded
# ---------------------------------------------------------------------------
def init_params(key, vocab_in, vocab_out, embedding, hidden=HIDDEN):
    ks = jax.random.split(key, 10)
    s = 0.1
    ep = _round_up(embedding, LANE)
    hp = _round_up(hidden, LANE)
    vp = _round_up(vocab_out, LANE)

    enc_emb = s * jax.random.normal(ks[0], (vocab_in, embedding), jnp.float32)
    enc_wih = s * jax.random.normal(ks[1], (embedding, 4 * hidden), jnp.float32)
    enc_whh = s * jax.random.normal(ks[2], (hidden, 4 * hidden), jnp.float32)
    enc_b = s * jax.random.normal(ks[3], (1, 4 * hidden), jnp.float32)      # = b_ih + b_hh
    dec_emb = s * jax.random.normal(ks[4], (vocab_out, embedding), jnp.float32)
    dec_wih = s * jax.random.normal(ks[5], (embedding, 4 * hidden), jnp.float32)
    dec_whh = s * jax.random.normal(ks[6], (hidden, 4 * hidden), jnp.float32)
    dec_b = s * jax.random.normal(ks[7], (1, 4 * hidden), jnp.float32)
    dec_wout = s * jax.random.normal(ks[8], (hidden, vocab_out), jnp.float32)
    dec_bout = s * jax.random.normal(ks[9], (1, vocab_out), jnp.float32)

    return {
        "E": embedding, "H": hidden, "V_out": vocab_out,
        "Ep": ep, "Hp": hp, "Vp": vp,
        "enc_emb": _pad_axis(enc_emb, ep, 1),
        "enc_wih": _pad_axis(_pad_gates(enc_wih, hp), ep, 0),
        "enc_whh": _pad_axis(_pad_gates(enc_whh, hp), hp, 0),
        "enc_b": _pad_gates(enc_b, hp),
        "dec_emb": _pad_axis(_pad_axis(dec_emb, ep, 1), vp, 0),
        # fused decoder weight: rows [W_ih (Ep); W_hh (Hp)] to match concat([x, h])
        "dec_wf": jnp.concatenate([_pad_axis(_pad_gates(dec_wih, hp), ep, 0),
                                   _pad_axis(_pad_gates(dec_whh, hp), hp, 0)], axis=0),
        "dec_b": _pad_gates(dec_b, hp),
        "dec_wout": _pad_axis(_pad_axis(dec_wout, hp, 0), vp, 1),
        "dec_bout": _pad_axis(dec_bout, vp, 1, value=-1e9),
    }


# ---------------------------------------------------------------------------
# Full forward pass (mirrors Seq2Seq.forward)
# ---------------------------------------------------------------------------
def seq2seq_forward(params, input_ids, target_ids,
                    teacher_forcing_ratio=0.4, py_rng=None):
    """Returns (output_idx [B, T] f32, output_matrix [B, T, V_out] f32)."""
    if py_rng is None:
        py_rng = random.Random(0)   # deterministic stand-in for `random.random()`
    B_real, out_len = target_ids.shape
    V_out, Ep = params["V_out"], params["Ep"]

    # pad batch to the f32 sublane count so vreg rows / MXU rows are not wasted
    Bp = max(8, _round_up(B_real, 8))
    input_p = jnp.pad(input_ids, ((0, Bp - B_real), (0, 0)))
    target_p = jnp.pad(target_ids, ((0, Bp - B_real), (0, 0)))
    S_in = input_p.shape[1]

    # --- encoder ---
    enc_x = jnp.take(params["enc_emb"], input_p, axis=0)                    # [Bp, S, Ep] (glue gather)
    enc_x_flat = jnp.transpose(enc_x, (1, 0, 2)).reshape(S_in * Bp, Ep)     # time-major, flattened
    h, c = run_encoder(enc_x_flat, Bp, params["enc_wih"],
                       params["enc_whh"], params["enc_b"])

    output_matrix = jnp.zeros((B_real, out_len, V_out), jnp.float32)
    output_idx = jnp.zeros((B_real, out_len), jnp.float32)
    if out_len <= 1:
        return output_idx, output_matrix

    # Teacher-forcing decisions: same host-RNG call sequence as the PyTorch loop,
    # precomputed so the whole decode runs as ONE fused Pallas grid.
    # force[di] = decision drawn at loop iteration di (di = 1 .. out_len-1);
    # it selects the input of the NEXT iteration, i.e. grid step t uses force[t].
    force = jnp.asarray([1] + [int(py_rng.random() < teacher_forcing_ratio)
                               for _ in range(1, out_len)], dtype=jnp.int32)

    # embeddings of every target token (teacher-forced input candidates), time-major
    tgt_emb_tm = jnp.transpose(jnp.take(params["dec_emb"], target_p, axis=0), (1, 0, 2))

    logp = run_decoder(force, tgt_emb_tm, h, c,
                       params["dec_emb"], params["dec_wf"], params["dec_b"],
                       params["dec_wout"], params["dec_bout"])
    logp = logp[:, :B_real, :V_out]                              # [out_len-1, B, V]
    idx = jnp.argmax(logp, axis=-1).astype(jnp.float32)          # top-1 (same values as in-kernel)

    output_matrix = jnp.concatenate(
        [jnp.zeros((1, B_real, V_out), jnp.float32), logp], axis=0).transpose(1, 0, 2)
    output_idx = jnp.concatenate(
        [jnp.zeros((1, B_real), jnp.float32), idx], axis=0).T
    return output_idx, output_matrix


if __name__ == "__main__":
    B, S_IN, S_OUT = 2, 8, 6
    EMB, V_IN, V_OUT = 32, 20, 16

    key = jax.random.PRNGKey(0)
    k_par, k_in, k_tgt = jax.random.split(key, 3)
    params = init_params(k_par, V_IN, V_OUT, EMB, HIDDEN)

    input_ids = jax.random.randint(k_in, (B, S_IN), 0, V_IN, dtype=jnp.int32)
    target_ids = jax.random.randint(k_tgt, (B, S_OUT), 0, V_OUT, dtype=jnp.int32)

    output_idx, output_matrix = seq2seq_forward(
        params, input_ids, target_ids, teacher_forcing_ratio=0.4,
        py_rng=random.Random(0))
    jax.block_until_ready((output_idx, output_matrix))

    assert output_idx.shape == (B, S_OUT)
    assert output_matrix.shape == (B, S_OUT, V_OUT)
    assert bool(jnp.all(jnp.isfinite(output_matrix)))
    print("KERNEL_OK")
</pallas_src>

<mosaic_0001>
module attributes {stable_mosaic.version = 11 : i64} {
  func.func @encoder_kernel(%arg0: memref<64x128xf32, #tpu.memory_space<vmem>>, %arg1: memref<128x512xf32, #tpu.memory_space<vmem>>, %arg2: memref<128x512xf32, #tpu.memory_space<vmem>>, %arg3: memref<1x512xf32, #tpu.memory_space<vmem>>, %arg4: memref<8x128xf32, #tpu.memory_space<vmem>>, %arg5: memref<8x128xf32, #tpu.memory_space<vmem>>, %arg6: memref<64x512xf32, #tpu.memory_space<vmem>>) attributes {dimension_semantics = [], scalar_prefetch = 0 : i64, scratch_operands = 1 : i64, tpu.core_type = #tpu.core_type<tc>} {
    %c0 = arith.constant 0 : index
    %c0_0 = arith.constant 0 : index
    %0 = vector.load %arg0[%c0, %c0_0] : memref<64x128xf32, #tpu.memory_space<vmem>>, vector<64x128xf32>
    %c0_1 = arith.constant 0 : index
    %c0_2 = arith.constant 0 : index
    %1 = vector.load %arg1[%c0_1, %c0_2] : memref<128x512xf32, #tpu.memory_space<vmem>>, vector<128x512xf32>
    %cst = arith.constant dense<0.000000e+00> : vector<64x512xf32>
    %2 = tpu.matmul %0, %1, %cst {dimension_numbers = #tpu.dot_dimension_numbers<[1], [0], [0], [1], [0, 0, 1, 1], [], []>} : vector<64x128xf32>, vector<128x512xf32>, vector<64x512xf32> -> vector<64x512xf32>
    %c0_3 = arith.constant 0 : index
    %c0_4 = arith.constant 0 : index
    %3 = vector.load %arg3[%c0_3, %c0_4] : memref<1x512xf32, #tpu.memory_space<vmem>>, vector<1x512xf32>
    %4 = vector.broadcast %3 : vector<1x512xf32> to vector<64x512xf32>
    %5 = arith.addf %2, %4 : vector<64x512xf32>
    %c0_5 = arith.constant 0 : index
    %c0_6 = arith.constant 0 : index
    %6 = vector.load %arg6[%c0_5, %c0_6] : memref<64x512xf32, #tpu.memory_space<vmem>>, vector<64x512xf32>
    tpu.vector_store %arg6[%c0_5, %c0_6], %5 {strides = array<i32>} : memref<64x512xf32, #tpu.memory_space<vmem>>, vector<64x512xf32>,
    %c0_7 = arith.constant 0 : index
    %c0_8 = arith.constant 0 : index
    %7 = vector.load %arg2[%c0_7, %c0_8] : memref<128x512xf32, #tpu.memory_space<vmem>>, vector<128x512xf32>
    %cst_9 = arith.constant 0.000000e+00 : f32
    %8 = vector.broadcast %cst_9 : f32 to vector<8x128xf32>
    %cst_10 = arith.constant 0.000000e+00 : f32
    %9 = vector.broadcast %cst_10 : f32 to vector<8x128xf32>
    %c0_11 = arith.constant 0 : index
    %c0_12 = arith.constant 0 : index
    %10 = vector.load %arg6[%c0_11, %c0_12] : memref<64x512xf32, #tpu.memory_space<vmem>>, vector<8x512xf32>
    %cst_13 = arith.constant dense<0.000000e+00> : vector<8x512xf32>
    %11 = tpu.matmul %8, %7, %cst_13 {dimension_numbers = #tpu.dot_dimension_numbers<[1], [0], [0], [1], [0, 0, 1, 1], [], []>} : vector<8x128xf32>, vector<128x512xf32>, vector<8x512xf32> -> vector<8x512xf32>
    %12 = arith.addf %10, %11 : vector<8x512xf32>
    %13 = vector.extract_strided_slice %12 {offsets = [0, 0], sizes = [8, 128], strides = [1, 1]} : vector<8x512xf32> to vector<8x128xf32>
    %14 = arith.negf %13 : vector<8x128xf32>
    %15 = math.exp %14 : vector<8x128xf32>
    %cst_14 = arith.constant 1.000000e+00 : f32
    %16 = vector.broadcast %cst_14 : f32 to vector<8x128xf32>
    %17 = arith.addf %16, %15 : vector<8x128xf32>
    %18 = arith.divf %16, %17 : vector<8x128xf32>
    %19 = vector.extract_strided_slice %12 {offsets = [0, 128], sizes = [8, 128], strides = [1, 1]} : vector<8x512xf32> to vector<8x128xf32>
    %20 = arith.negf %19 : vector<8x128xf32>
    %21 = math.exp %20 : vector<8x128xf32>
    %cst_15 = arith.constant 1.000000e+00 : f32
    %22 = vector.broadcast %cst_15 : f32 to vector<8x128xf32>
    %23 = arith.addf %22, %21 : vector<8x128xf32>
    %24 = arith.divf %22, %23 : vector<8x128xf32>
    %25 = vector.extract_strided_slice %12 {offsets = [0, 256], sizes = [8, 128], strides = [1, 1]} : vector<8x512xf32> to vector<8x128xf32>
    %26 = math.tanh %25 : vector<8x128xf32>
    %27 = vector.extract_strided_slice %12 {offsets = [0, 384], sizes = [8, 128], strides = [1, 1]} : vector<8x512xf32> to vector<8x128xf32>
    %28 = arith.negf %27 : vector<8x128xf32>
    %29 = math.exp %28 : vector<8x128xf32>
    %cst_16 = arith.constant 1.000000e+00 : f32
    %30 = vector.broadcast %cst_16 : f32 to vector<8x128xf32>
    %31 = arith.addf %30, %29 : vector<8x128xf32>
    %32 = arith.divf %30, %31 : vector<8x128xf32>
    %33 = arith.mulf %24, %9 : vector<8x128xf32>
    %34 = arith.mulf %18, %26 : vector<8x128xf32>
    %35 = arith.addf %33, %34 : vector<8x128xf32>
    %36 = math.tanh %35 : vector<8x128xf32>
    %37 = arith.mulf %32, %36 : vector<8x128xf32>
    %c8 = arith.constant 8 : index
    %c0_17 = arith.constant 0 : index
    %38 = vector.load %arg6[%c8, %c0_17] : memref<64x512xf32, #tpu.memory_space<vmem>>, vector<8x512xf32>
    %cst_18 = arith.constant dense<0.000000e+00> : vector<8x512xf32>
    %39 = tpu.matmul %37, %7, %cst_18 {dimension_numbers = #tpu.dot_dimension_numbers<[1], [0], [0], [1], [0, 0, 1, 1], [], []>} : vector<8x128xf32>, vector<128x512xf32>, vector<8x512xf32> -> vector<8x512xf32>
    %40 = arith.addf %38, %39 : vector<8x512xf32>
    %41 = vector.extract_strided_slice %40 {offsets = [0, 0], sizes = [8, 128], strides = [1, 1]} : vector<8x512xf32> to vector<8x128xf32>
    %42 = arith.negf %41 : vector<8x128xf32>
    %43 = math.exp %42 : vector<8x128xf32>
    %cst_19 = arith.constant 1.000000e+00 : f32
    %44 = vector.broadcast %cst_19 : f32 to vector<8x128xf32>
    %45 = arith.addf %44, %43 : vector<8x128xf32>
    %46 = arith.divf %44, %45 : vector<8x128xf32>
    %47 = vector.extract_strided_slice %40 {offsets = [0, 128], sizes = [8, 128], strides = [1, 1]} : vector<8x512xf32> to vector<8x128xf32>
    %48 = arith.negf %47 : vector<8x128xf32>
    %49 = math.exp %48 : vector<8x128xf32>
    %cst_20 = arith.constant 1.000000e+00 : f32
    %50 = vector.broadcast %cst_20 : f32 to vector<8x128xf32>
    %51 = arith.addf %50, %49 : vector<8x128xf32>
    %52 = arith.divf %50, %51 : vector<8x128xf32>
    %53 = vector.extract_strided_slice %40 {offsets = [0, 256], sizes = [8, 128], strides = [1, 1]} : vector<8x512xf32> to vector<8x128xf32>
    %54 = math.tanh %53 : vector<8x128xf32>
    %55 = vector.extract_strided_slice %40 {offsets = [0, 384], sizes = [8, 128], strides = [1, 1]} : vector<8x512xf32> to vector<8x128xf32>
    %56 = arith.negf %55 : vector<8x128xf32>
    %57 = math.exp %56 : vector<8x128xf32>
    %cst_21 = arith.constant 1.000000e+00 : f32
    %58 = vector.broadcast %cst_21 : f32 to vector<8x128xf32>
    %59 = arith.addf %58, %57 : vector<8x128xf32>
    %60 = arith.divf %58, %59 : vector<8x128xf32>
    %61 = arith.mulf %52, %35 : vector<8x128xf32>
    %62 = arith.mulf %46, %54 : vector<8x128xf32>
    %63 = arith.addf %61, %62 : vector<8x128xf32>
    %64 = math.tanh %63 : vector<8x128xf32>
    %65 = arith.mulf %60, %64 : vector<8x128xf32>
    %c16 = arith.constant 16 : index
    %c0_22 = arith.constant 0 : index
    %66 = vector.load %arg6[%c16, %c0_22] : memref<64x512xf32, #tpu.memory_space<vmem>>, vector<8x512xf32>
    %cst_23 = arith.constant dense<0.000000e+00> : vector<8x512xf32>
    %67 = tpu.matmul %65, %7, %cst_23 {dimension_numbers = #tpu.dot_dimension_numbers<[1], [0], [0], [1], [0, 0, 1, 1], [], []>} : vector<8x128xf32>, vector<128x512xf32>, vector<8x512xf32> -> vector<8x512xf32>
    %68 = arith.addf %66, %67 : vector<8x512xf32>
    %69 = vector.extract_strided_slice %68 {offsets = [0, 0], sizes = [8, 128], strides = [1, 1]} : vector<8x512xf32> to vector<8x128xf32>
    %70 = arith.negf %69 : vector<8x128xf32>
    %71 = math.exp %70 : vector<8x128xf32>
    %cst_24 = arith.constant 1.000000e+00 : f32
    %72 = vector.broadcast %cst_24 : f32 to vector<8x128xf32>
    %73 = arith.addf %72, %71 : vector<8x128xf32>
    %74 = arith.divf %72, %73 : vector<8x128xf32>
    %75 = vector.extract_strided_slice %68 {offsets = [0, 128], sizes = [8, 128], strides = [1, 1]} : vector<8x512xf32> to vector<8x128xf32>
    %76 = arith.negf %75 : vector<8x128xf32>
    %77 = math.exp %76 : vector<8x128xf32>
    %cst_25 = arith.constant 1.000000e+00 : f32
    %78 = vector.broadcast %cst_25 : f32 to vector<8x128xf32>
    %79 = arith.addf %78, %77 : vector<8x128xf32>
    %80 = arith.divf %78, %79 : vector<8x128xf32>
    %81 = vector.extract_strided_slice %68 {offsets = [0, 256], sizes = [8, 128], strides = [1, 1]} : vector<8x512xf32> to vector<8x128xf32>
    %82 = math.tanh %81 : vector<8x128xf32>
    %83 = vector.extract_strided_slice %68 {offsets = [0, 384], sizes = [8, 128], strides = [1, 1]} : vector<8x512xf32> to vector<8x128xf32>
    %84 = arith.negf %83 : vector<8x128xf32>
    %85 = math.exp %84 : vector<8x128xf32>
    %cst_26 = arith.constant 1.000000e+00 : f32
    %86 = vector.broadcast %cst_26 : f32 to vector<8x128xf32>
    %87 = arith.addf %86, %85 : vector<8x128xf32>
    %88 = arith.divf %86, %87 : vector<8x128xf32>
    %89 = arith.mulf %80, %63 : vector<8x128xf32>
    %90 = arith.mulf %74, %82 : vector<8x128xf32>
    %91 = arith.addf %89, %90 : vector<8x128xf32>
    %92 = math.tanh %91 : vector<8x128xf32>
    %93 = arith.mulf %88, %92 : vector<8x128xf32>
    %c24 = arith.constant 24 : index
    %c0_27 = arith.constant 0 : index
    %94 = vector.load %arg6[%c24, %c0_27] : memref<64x512xf32, #tpu.memory_space<vmem>>, vector<8x512xf32>
    %cst_28 = arith.constant dense<0.000000e+00> : vector<8x512xf32>
    %95 = tpu.matmul %93, %7, %cst_28 {dimension_numbers = #tpu.dot_dimension_numbers<[1], [0], [0], [1], [0, 0, 1, 1], [], []>} : vector<8x128xf32>, vector<128x512xf32>, vector<8x512xf32> -> vector<8x512xf32>
    %96 = arith.addf %94, %95 : vector<8x512xf32>
    %97 = vector.extract_strided_slice %96 {offsets = [0, 0], sizes = [8, 128], strides = [1, 1]} : vector<8x512xf32> to vector<8x128xf32>
    %98 = arith.negf %97 : vector<8x128xf32>
    %99 = math.exp %98 : vector<8x128xf32>
    %cst_29 = arith.constant 1.000000e+00 : f32
    %100 = vector.broadcast %cst_29 : f32 to vector<8x128xf32>
    %101 = arith.addf %100, %99 : vector<8x128xf32>
    %102 = arith.divf %100, %101 : vector<8x128xf32>
    %103 = vector.extract_strided_slice %96 {offsets = [0, 128], sizes = [8, 128], strides = [1, 1]} : vector<8x512xf32> to vector<8x128xf32>
    %104 = arith.negf %103 : vector<8x128xf32>
    %105 = math.exp %104 : vector<8x128xf32>
    %cst_30 = arith.constant 1.000000e+00 : f32
    %106 = vector.broadcast %cst_30 : f32 to vector<8x128xf32>
    %107 = arith.addf %106, %105 : vector<8x128xf32>
    %108 = arith.divf %106, %107 : vector<8x128xf32>
    %109 = vector.extract_strided_slice %96 {offsets = [0, 256], sizes = [8, 128], strides = [1, 1]} : vector<8x512xf32> to vector<8x128xf32>
    %110 = math.tanh %109 : vector<8x128xf32>
    %111 = vector.extract_strided_slice %96 {offsets = [0, 384], sizes = [8, 128], strides = [1, 1]} : vector<8x512xf32> to vector<8x128xf32>
    %112 = arith.negf %111 : vector<8x128xf32>
    %113 = math.exp %112 : vector<8x128xf32>
    %cst_31 = arith.constant 1.000000e+00 : f32
    %114 = vector.broadcast %cst_31 : f32 to vector<8x128xf32>
    %115 = arith.addf %114, %113 : vector<8x128xf32>
    %116 = arith.divf %114, %115 : vector<8x128xf32>
    %117 = arith.mulf %108, %91 : vector<8x128xf32>
    %118 = arith.mulf %102, %110 : vector<8x128xf32>
    %119 = arith.addf %117, %118 : vector<8x128xf32>
    %120 = math.tanh %119 : vector<8x128xf32>
    %121 = arith.mulf %116, %120 : vector<8x128xf32>
    %c32 = arith.constant 32 : index
    %c0_32 = arith.constant 0 : index
    %122 = vector.load %arg6[%c32, %c0_32] : memref<64x512xf32, #tpu.memory_space<vmem>>, vector<8x512xf32>
    %cst_33 = arith.constant dense<0.000000e+00> : vector<8x512xf32>
    %123 = tpu.matmul %121, %7, %cst_33 {dimension_numbers = #tpu.dot_dimension_numbers<[1], [0], [0], [1], [0, 0, 1, 1], [], []>} : vector<8x128xf32>, vector<128x512xf32>, vector<8x512xf32> -> vector<8x512xf32>
    %124 = arith.addf %122, %123 : vector<8x512xf32>
    %125 = vector.extract_strided_slice %124 {offsets = [0, 0], sizes = [8, 128], strides = [1, 1]} : vector<8x512xf32> to vector<8x128xf32>
    %126 = arith.negf %125 : vector<8x128xf32>
    %127 = math.exp %126 : vector<8x128xf32>
    %cst_34 = arith.constant 1.000000e+00 : f32
    %128 = vector.broadcast %cst_34 : f32 to vector<8x128xf32>
    %129 = arith.addf %128, %127 : vector<8x128xf32>
    %130 = arith.divf %128, %129 : vector<8x128xf32>
    %131 = vector.extract_strided_slice %124 {offsets = [0, 128], sizes = [8, 128], strides = [1, 1]} : vector<8x512xf32> to vector<8x128xf32>
    %132 = arith.negf %131 : vector<8x128xf32>
    %133 = math.exp %132 : vector<8x128xf32>
    %cst_35 = arith.constant 1.000000e+00 : f32
    %134 = vector.broadcast %cst_35 : f32 to vector<8x128xf32>
    %135 = arith.addf %134, %133 : vector<8x128xf32>
    %136 = arith.divf %134, %135 : vector<8x128xf32>
    %137 = vector.extract_strided_slice %124 {offsets = [0, 256], sizes = [8, 128], strides = [1, 1]} : vector<8x512xf32> to vector<8x128xf32>
    %138 = math.tanh %137 : vector<8x128xf32>
    %139 = vector.extract_strided_slice %124 {offsets = [0, 384], sizes = [8, 128], strides = [1, 1]} : vector<8x512xf32> to vector<8x128xf32>
    %140 = arith.negf %139 : vector<8x128xf32>
    %141 = math.exp %140 : vector<8x128xf32>
    %cst_36 = arith.constant 1.000000e+00 : f32
    %142 = vector.broadcast %cst_36 : f32 to vector<8x128xf32>
    %143 = arith.addf %142, %141 : vector<8x128xf32>
    %144 = arith.divf %142, %143 : vector<8x128xf32>
    %145 = arith.mulf %136, %119 : vector<8x128xf32>
    %146 = arith.mulf %130, %138 : vector<8x128xf32>
    %147 = arith.addf %145, %146 : vector<8x128xf32>
    %148 = math.tanh %147 : vector<8x128xf32>
    %149 = arith.mulf %144, %148 : vector<8x128xf32>
    %c40 = arith.constant 40 : index
    %c0_37 = arith.constant 0 : index
    %150 = vector.load %arg6[%c40, %c0_37] : memref<64x512xf32, #tpu.memory_space<vmem>>, vector<8x512xf32>
    %cst_38 = arith.constant dense<0.000000e+00> : vector<8x512xf32>
    %151 = tpu.matmul %149, %7, %cst_38 {dimension_numbers = #tpu.dot_dimension_numbers<[1], [0], [0], [1], [0, 0, 1, 1], [], []>} : vector<8x128xf32>, vector<128x512xf32>, vector<8x512xf32> -> vector<8x512xf32>
    %152 = arith.addf %150, %151 : vector<8x512xf32>
    %153 = vector.extract_strided_slice %152 {offsets = [0, 0], sizes = [8, 128], strides = [1, 1]} : vector<8x512xf32> to vector<8x128xf32>
    %154 = arith.negf %153 : vector<8x128xf32>
    %155 = math.exp %154 : vector<8x128xf32>
    %cst_39 = arith.constant 1.000000e+00 : f32
    %156 = vector.broadcast %cst_39 : f32 to vector<8x128xf32>
    %157 = arith.addf %156, %155 : vector<8x128xf32>
    %158 = arith.divf %156, %157 : vector<8x128xf32>
    %159 = vector.extract_strided_slice %152 {offsets = [0, 128], sizes = [8, 128], strides = [1, 1]} : vector<8x512xf32> to vector<8x128xf32>
    %160 = arith.negf %159 : vector<8x128xf32>
    %161 = math.exp %160 : vector<8x128xf32>
    %cst_40 = arith.constant 1.000000e+00 : f32
    %162 = vector.broadcast %cst_40 : f32 to vector<8x128xf32>
    %163 = arith.addf %162, %161 : vector<8x128xf32>
    %164 = arith.divf %162, %163 : vector<8x128xf32>
    %165 = vector.extract_strided_slice %152 {offsets = [0, 256], sizes = [8, 128], strides = [1, 1]} : vector<8x512xf32> to vector<8x128xf32>
    %166 = math.tanh %165 : vector<8x128xf32>
    %167 = vector.extract_strided_slice %152 {offsets = [0, 384], sizes = [8, 128], strides = [1, 1]} : vector<8x512xf32> to vector<8x128xf32>
    %168 = arith.negf %167 : vector<8x128xf32>
    %169 = math.exp %168 : vector<8x128xf32>
    %cst_41 = arith.constant 1.000000e+00 : f32
    %170 = vector.broadcast %cst_41 : f32 to vector<8x128xf32>
    %171 = arith.addf %170, %169 : vector<8x128xf32>
    %172 = arith.divf %170, %171 : vector<8x128xf32>
    %173 = arith.mulf %164, %147 : vector<8x128xf32>
    %174 = arith.mulf %158, %166 : vector<8x128xf32>
    %175 = arith.addf %173, %174 : vector<8x128xf32>
    %176 = math.tanh %175 : vector<8x128xf32>
    %177 = arith.mulf %172, %176 : vector<8x128xf32>
    %c48 = arith.constant 48 : index
    %c0_42 = arith.constant 0 : index
    %178 = vector.load %arg6[%c48, %c0_42] : memref<64x512xf32, #tpu.memory_space<vmem>>, vector<8x512xf32>
    %cst_43 = arith.constant dense<0.000000e+00> : vector<8x512xf32>
    %179 = tpu.matmul %177, %7, %cst_43 {dimension_numbers = #tpu.dot_dimension_numbers<[1], [0], [0], [1], [0, 0, 1, 1], [], []>} : vector<8x128xf32>, vector<128x512xf32>, vector<8x512xf32> -> vector<8x512xf32>
    %180 = arith.addf %178, %179 : vector<8x512xf32>
    %181 = vector.extract_strided_slice %180 {offsets = [0, 0], sizes = [8, 128], strides = [1, 1]} : vector<8x512xf32> to vector<8x128xf32>
    %182 = arith.negf %181 : vector<8x128xf32>
    %183 = math.exp %182 : vector<8x128xf32>
    %cst_44 = arith.constant 1.000000e+00 : f32
    %184 = vector.broadcast %cst_44 : f32 to vector<8x128xf32>
    %185 = arith.addf %184, %183 : vector<8x128xf32>
    %186 = arith.divf %184, %185 : vector<8x128xf32>
    %187 = vector.extract_strided_slice %180 {offsets = [0, 128], sizes = [8, 128], strides = [1, 1]} : vector<8x512xf32> to vector<8x128xf32>
    %188 = arith.negf %187 : vector<8x128xf32>
    %189 = math.exp %188 : vector<8x128xf32>
    %cst_45 = arith.constant 1.000000e+00 : f32
    %190 = vector.broadcast %cst_45 : f32 to vector<8x128xf32>
    %191 = arith.addf %190, %189 : vector<8x128xf32>
    %192 = arith.divf %190, %191 : vector<8x128xf32>
    %193 = vector.extract_strided_slice %180 {offsets = [0, 256], sizes = [8, 128], strides = [1, 1]} : vector<8x512xf32> to vector<8x128xf32>
    %194 = math.tanh %193 : vector<8x128xf32>
    %195 = vector.extract_strided_slice %180 {offsets = [0, 384], sizes = [8, 128], strides = [1, 1]} : vector<8x512xf32> to vector<8x128xf32>
    %196 = arith.negf %195 : vector<8x128xf32>
    %197 = math.exp %196 : vector<8x128xf32>
    %cst_46 = arith.constant 1.000000e+00 : f32
    %198 = vector.broadcast %cst_46 : f32 to vector<8x128xf32>
    %199 = arith.addf %198, %197 : vector<8x128xf32>
    %200 = arith.divf %198, %199 : vector<8x128xf32>
    %201 = arith.mulf %192, %175 : vector<8x128xf32>
    %202 = arith.mulf %186, %194 : vector<8x128xf32>
    %203 = arith.addf %201, %202 : vector<8x128xf32>
    %204 = math.tanh %203 : vector<8x128xf32>
    %205 = arith.mulf %200, %204 : vector<8x128xf32>
    %c56 = arith.constant 56 : index
    %c0_47 = arith.constant 0 : index
    %206 = vector.load %arg6[%c56, %c0_47] : memref<64x512xf32, #tpu.memory_space<vmem>>, vector<8x512xf32>
    %cst_48 = arith.constant dense<0.000000e+00> : vector<8x512xf32>
    %207 = tpu.matmul %205, %7, %cst_48 {dimension_numbers = #tpu.dot_dimension_numbers<[1], [0], [0], [1], [0, 0, 1, 1], [], []>} : vector<8x128xf32>, vector<128x512xf32>, vector<8x512xf32> -> vector<8x512xf32>
    %208 = arith.addf %206, %207 : vector<8x512xf32>
    %209 = vector.extract_strided_slice %208 {offsets = [0, 0], sizes = [8, 128], strides = [1, 1]} : vector<8x512xf32> to vector<8x128xf32>
    %210 = arith.negf %209 : vector<8x128xf32>
    %211 = math.exp %210 : vector<8x128xf32>
    %cst_49 = arith.constant 1.000000e+00 : f32
    %212 = vector.broadcast %cst_49 : f32 to vector<8x128xf32>
    %213 = arith.addf %212, %211 : vector<8x128xf32>
    %214 = arith.divf %212, %213 : vector<8x128xf32>
    %215 = vector.extract_strided_slice %208 {offsets = [0, 128], sizes = [8, 128], strides = [1, 1]} : vector<8x512xf32> to vector<8x128xf32>
    %216 = arith.negf %215 : vector<8x128xf32>
    %217 = math.exp %216 : vector<8x128xf32>
    %cst_50 = arith.constant 1.000000e+00 : f32
    %218 = vector.broadcast %cst_50 : f32 to vector<8x128xf32>
    %219 = arith.addf %218, %217 : vector<8x128xf32>
    %220 = arith.divf %218, %219 : vector<8x128xf32>
    %221 = vector.extract_strided_slice %208 {offsets = [0, 256], sizes = [8, 128], strides = [1, 1]} : vector<8x512xf32> to vector<8x128xf32>
    %222 = math.tanh %221 : vector<8x128xf32>
    %223 = vector.extract_strided_slice %208 {offsets = [0, 384], sizes = [8, 128], strides = [1, 1]} : vector<8x512xf32> to vector<8x128xf32>
    %224 = arith.negf %223 : vector<8x128xf32>
    %225 = math.exp %224 : vector<8x128xf32>
    %cst_51 = arith.constant 1.000000e+00 : f32
    %226 = vector.broadcast %cst_51 : f32 to vector<8x128xf32>
    %227 = arith.addf %226, %225 : vector<8x128xf32>
    %228 = arith.divf %226, %227 : vector<8x128xf32>
    %229 = arith.mulf %220, %203 : vector<8x128xf32>
    %230 = arith.mulf %214, %222 : vector<8x128xf32>
    %231 = arith.addf %229, %230 : vector<8x128xf32>
    %232 = math.tanh %231 : vector<8x128xf32>
    %233 = arith.mulf %228, %232 : vector<8x128xf32>
    %c0_52 = arith.constant 0 : index
    %c0_53 = arith.constant 0 : index
    %234 = vector.load %arg4[%c0_52, %c0_53] : memref<8x128xf32, #tpu.memory_space<vmem>>, vector<8x128xf32>
    tpu.vector_store %arg4[%c0_52, %c0_53], %233 {strides = array<i32>} : memref<8x128xf32, #tpu.memory_space<vmem>>, vector<8x128xf32>,
    %c0_54 = arith.constant 0 : index
    %c0_55 = arith.constant 0 : index
    %235 = vector.load %arg5[%c0_54, %c0_55] : memref<8x128xf32, #tpu.memory_space<vmem>>, vector<8x128xf32>
    tpu.vector_store %arg5[%c0_54, %c0_55], %231 {strides = array<i32>} : memref<8x128xf32, #tpu.memory_space<vmem>>, vector<8x128xf32>,
    return
  }
}

</mosaic_0001>

<bundles_post_ra>
// kernel: tpu_custom_call.1
= control target key start
LH: loop header
LB: loop body
LE: loop exit
PB: predicated region body
PF: predicated region fallthrough
CT: control target
= control target key end

     0   :  { %11 = vsyncpa [#allocation4], 0  ;;  %s3349_s0 = inlined_call_operand.hbm [shape: f32[64,128], index: 0, kind: input, shape index: {}]   ;;  %s3350_s1 = inlined_call_operand.hbm [shape: f32[128,512], index: 1, kind: input, shape index: {}]   ;;  %s3351_s2 = inlined_call_operand.hbm [shape: f32[128,512], index: 2, kind: input, shape index: {}]   ;;  %s3352_s3 = inlined_call_operand.vmem [shape: f32[1,512], index: 3, kind: input, shape index: {}]   ;;  %s3353_s4 = inlined_call_operand.hbm [shape: f32[8,128], index: 4, kind: output, shape index: {0}]   ;;  %s3354_s5 = inlined_call_operand.hbm [shape: f32[8,128], index: 5, kind: output, shape index: {1}]  }
   0x1   :  { %12 = vsyncpa [#allocation7], 0 }
   0x2   :  { %13 = vsyncpa [#allocation5], 0 }
   0x3   :  { %14 = vsyncpa [#allocation11], 0  ;;  %s2822_s18 = smov [#allocation6]   ;;  %s2704_s22 = scalar_lea.hbm %s3350_s1, 8192 }
   0x4   :  { %s32_s19 = sshll.u32 %s2822_s18, 4  ;;  %p2705_p0 = scmp.ne.s32.totalorder %s3350_s1, %s2704_s22  ;;  %s33_s19 = int_to_ptr.vmem [resolvable:$true] %s32_s19 }
   0x5   :  { %p2708_p1 = scmp.lt.u32.totalorder %s2704_s22, %s3350_s1 }
   0x7   :  { %p2710_p2 = pnand %p2708_p1, %p2705_p0 }
   0x9   :  { %2713 = shalt.err (!%p2710_p2)
}
   0xa   :  { %s2714_s27 = scalar_lea.vmem %s33_s19, 8192  ;;  %p2719_p4 = scmp.lt.s32.totalorder %s33_s19, %s33_s19 }
   0xb   :  { %p2715_p3 = scmp.ne.s32.totalorder %s33_s19, %s2714_s27  ;;  %p2720_p5 = scmp.lt.s32.totalorder %s2714_s27, %s2714_s27 }
   0xd   :  { %p2721_p6 = por %p2720_p5, %p2719_p4 }
   0xf   :  { %p2722_p7 = pnand %p2721_p6, %p2715_p3 }
  0x11   :  { %2725 = shalt.err (!%p2722_p7)
}
  0x12   :  { %s2823_s28 = smov 512   ;;  %s2824_s29 = smov 32  }
  0x13   :  { %38 = dma.hbm_to_vmem [thread:$0]  %s3350_s1, 8192, %s33_s19, [#allocation7], %s2823_s28, %s2823_s28, %s2824_s29  }
  0x14   :  { %s2825_s7 = smov [#allocation3]   ;;  %s2726_s11 = scalar_lea.hbm %s3349_s0, 1024 }
  0x15   :  { %s20_s8 = sshll.u32 %s2825_s7, 4  ;;  %p2727_p8 = scmp.ne.s32.totalorder %s3349_s0, %s2726_s11  ;;  %s21_s8 = int_to_ptr.vmem [resolvable:$true] %s20_s8 }
  0x16   :  { %p2730_p9 = scmp.lt.u32.totalorder %s2726_s11, %s3349_s0 }
  0x18   :  { %p2732_p10 = pnand %p2730_p9, %p2727_p8 }
  0x1a   :  { %2735 = shalt.err (!%p2732_p10)
}
  0x1b   :  { %s2736_s16 = scalar_lea.vmem %s21_s8, 1024  ;;  %p2741_p12 = scmp.lt.s32.totalorder %s21_s8, %s21_s8 }
  0x1c   :  { %p2737_p11 = scmp.ne.s32.totalorder %s21_s8, %s2736_s16  ;;  %p2742_p13 = scmp.lt.s32.totalorder %s2736_s16, %s2736_s16 }
  0x1e   :  { %p2743_p0 = por %p2742_p13, %p2741_p12 }
  0x20   :  { %p2744_p1 = pnand %p2743_p0, %p2737_p11 }
  0x22   :  { %2747 = shalt.err (!%p2744_p1)
}
  0x23   :  { %s2826_s1 = smov 128   ;;  %s2827_s17 = smov 8  }
  0x24   :  { %26 = dma.hbm_to_vmem [thread:$0]  %s3349_s0, 1024, %s21_s8, [#allocation4], %s2826_s1, %s2826_s1, %s2827_s17  }
  0x25   :  { %s2828_s20 = smov [#allocation8]   ;;  %s2748_s24 = scalar_lea.hbm %s3351_s2, 8192 }
  0x26   :  { %s44_s21 = sshll.u32 %s2828_s20, 4  ;;  %p2749_p2 = scmp.ne.s32.totalorder %s3351_s2, %s2748_s24  ;;  %s45_s21 = int_to_ptr.vmem [resolvable:$true] %s44_s21 }
  0x27   :  { %p2752_p3 = scmp.lt.u32.totalorder %s2748_s24, %s3351_s2 }
  0x29   :  { %p2754_p4 = pnand %p2752_p3, %p2749_p2 }
  0x2b   :  { %2757 = shalt.err (!%p2754_p4)
}
  0x2c   :  { %s2758_s6 = scalar_lea.vmem %s45_s21, 8192  ;;  %p2763_p6 = scmp.lt.s32.totalorder %s45_s21, %s45_s21 }
  0x2d   :  { %p2759_p5 = scmp.ne.s32.totalorder %s45_s21, %s2758_s6  ;;  %p2764_p7 = scmp.lt.s32.totalorder %s2758_s6, %s2758_s6 }
  0x2f   :  { %p2765_p8 = por %p2764_p7, %p2763_p6 }
  0x31   :  { %p2766_p9 = pnand %p2765_p8, %p2759_p5 }
  0x33   :  { %2769 = shalt.err (!%p2766_p9)
}
  0x34   :  { %50 = dma.hbm_to_vmem [thread:$0]  %s3351_s2, 8192, %s45_s21, [#allocation7], %s2823_s28, %s2823_s28, %s2824_s29  }
  0x35   :  { %2814 = dma.done.wait [#allocation4], 1024  }
  0x36   :  { %2815 = vsyncadd [#allocation4], 4294966272 }
  0x37   :  { %2816 = dma.done.wait [#allocation7], 16384  }
  0x38   :  { %2817 = vsyncadd [#allocation7], 4294950912  ;;  %v2829_v0 = vmov 0.0   ;;  %v71_v1 = vld [vmem:[#allocation6 + $0x8] sm:$0xff]  ;;  %v73_v3 = vld [vmem:[#allocation6 + $0x18] sm:$0xff] }
  0x39   :  { %220 = vmatprep.mubr.f32.mxu0 %v2829_v0  ;;  %333 = vmatprep.mubr.f32.mxu1 %v2829_v0  ;;  %v75_v2 = vld [vmem:[#allocation6 + $0x28] sm:$0xff]  ;;  %v77_v5 = vld [vmem:[#allocation6 + $0x38] sm:$0xff]  ;;  %v70_v6 = vld [vmem:[#allocation6] sm:$0xff] }
  0x3a   :  { %v1926_v4 = vpack.c.bf16 %v75_v2, %v71_v1  ;;  %v74_v7 = vld [vmem:[#allocation6 + $0x20] sm:$0xff]  ;;  %v1958_v8 = vpack.c.bf16 %v77_v5, %v73_v3  ;;  %v72_v10 = vld [vmem:[#allocation6 + $0x10] sm:$0xff]  ;;  %v79_v12 = vld [vmem:[#allocation6 + $0x48] sm:$0xff] }
  0x3b   :  { %v1928_v9 = vpack.c.bf16 %v74_v7, %v70_v6  ;;  %v76_v11 = vld [vmem:[#allocation6 + $0x30] sm:$0xff]  ;;  %v83_v14 = vld [vmem:[#allocation6 + $0x68] sm:$0xff]  ;;  %v81_v15 = vld [vmem:[#allocation6 + $0x58] sm:$0xff] }
  0x3c   :  { %1927 = vmatprep.subr.bf16.mxu0 %v1926_v4  ;;  %v1960_v13 = vpack.c.bf16 %v76_v11, %v72_v10  ;;  %v85_v16 = vld [vmem:[#allocation6 + $0x78] sm:$0xff]  ;;  %1959 = vmatprep.subr.bf16.mxu1 %v1958_v8  ;;  %v1930_v17 = vpack.c.bf16 %v83_v14, %v79_v12  ;;  %v78_v19 = vld [vmem:[#allocation6 + $0x40] sm:$0xff]  ;;  %v80_v21 = vld [vmem:[#allocation6 + $0x50] sm:$0xff] }
  0x3d   :  { %1929 = vmatpush1.bf16.msra.mxu0 %v1928_v9  ;;  %v1962_v18 = vpack.c.bf16 %v85_v16, %v81_v15  ;;  %v82_v20 = vld [vmem:[#allocation6 + $0x60] sm:$0xff]  ;;  %v84_v23 = vld [vmem:[#allocation6 + $0x70] sm:$0xff]  ;;  %v87_v24 = vld [vmem:[#allocation6 + $0x88] sm:$0xff] }
  0x3e   :  { %1961 = vmatpush1.bf16.msra.mxu1 %v1960_v13  ;;  %v1932_v22 = vpack.c.bf16 %v82_v20, %v78_v19  ;;  %v91_v25 = vld [vmem:[#allocation6 + $0xa8] sm:$0xff]  ;;  %1931 = vmatprep.subr.bf16.mxu0 %v1930_v17  ;;  %v1964_v26 = vpack.c.bf16 %v84_v23, %v80_v21  ;;  %v89_v28 = vld [vmem:[#allocation6 + $0x98] sm:$0xff]  ;;  %v86_v30 = vld [vmem:[#allocation6 + $0x80] sm:$0xff] }
  0x3f   :  { %1963 = vmatprep.subr.bf16.mxu1 %v1962_v18  ;;  %v1934_v27 = vpack.c.bf16 %v91_v25, %v87_v24  ;;  %v93_v29 = vld [vmem:[#allocation6 + $0xb8] sm:$0xff]  ;;  %v90_v32 = vld [vmem:[#allocation6 + $0xa0] sm:$0xff]  ;;  %v88_v33 = vld [vmem:[#allocation6 + $0x90] sm:$0xff] }
  0x40   :  { %v1966_v31 = vpack.c.bf16 %v93_v29, %v89_v28  ;;  %v92_v34 = vld [vmem:[#allocation6 + $0xb0] sm:$0xff]  ;;  %v1936_v35 = vpack.c.bf16 %v90_v32, %v86_v30  ;;  %v95_v36 = vld [vmem:[#allocation6 + $0xc8] sm:$0xff]  ;;  %v97_v38 = vld [vmem:[#allocation6 + $0xd8] sm:$0xff] }
  0x41   :  { %1933 = vmatpush1.bf16.msra.mxu0 %v1932_v22  ;;  %v99_v37 = vld [vmem:[#allocation6 + $0xe8] sm:$0xff]  ;;  %v1968_v39 = vpack.c.bf16 %v92_v34, %v88_v33  ;;  %v101_v41 = vld [vmem:[#allocation6 + $0xf8] sm:$0xff]  ;;  %v94_v42 = vld [vmem:[#allocation6 + $0xc0] sm:$0xff] }
  0x42   :  { %1965 = vmatpush1.bf16.msra.mxu1 %v1964_v26  ;;  %1935 = vmatprep.subr.bf16.mxu0 %v1934_v27  ;;  %v1938_v40 = vpack.c.bf16 %v99_v37, %v95_v36  ;;  %v98_v43 = vld [vmem:[#allocation6 + $0xe0] sm:$0xff]  ;;  %v1970_v44 = vpack.c.bf16 %v101_v41, %v97_v38  ;;  %v96_v45 = vld [vmem:[#allocation6 + $0xd0] sm:$0xff]  ;;  %v103_v47 = vld [vmem:[#allocation6 + $0x108] sm:$0xff] }
  0x43   :  { %1967 = vmatprep.subr.bf16.mxu1 %v1966_v31  ;;  %v100_v46 = vld [vmem:[#allocation6 + $0xf0] sm:$0xff]  ;;  %v107_v48 = vld [vmem:[#allocation6 + $0x128] sm:$0xff]  ;;  %v105_v49 = vld [vmem:[#allocation6 + $0x118] sm:$0xff]  ;;  %v1940_v51 = vpack.c.bf16 %v98_v43, %v94_v42 }
  0x44   :  { %v109_v50 = vld [vmem:[#allocation6 + $0x138] sm:$0xff]  ;;  %v1972_v52 = vpack.c.bf16 %v100_v46, %v96_v45  ;;  %v1942_v53 = vpack.c.bf16 %v107_v48, %v103_v47  ;;  %v102_v54 = vld [vmem:[#allocation6 + $0x100] sm:$0xff]  ;;  %v104_v56 = vld [vmem:[#allocation6 + $0x110] sm:$0xff] }
  0x45   :  { %1937 = vmatpush1.bf16.msra.mxu0 %v1936_v35  ;;  %v106_v55 = vld [vmem:[#allocation6 + $0x120] sm:$0xff]  ;;  %v1974_v57 = vpack.c.bf16 %v109_v50, %v105_v49  ;;  %v108_v58 = vld [vmem:[#allocation6 + $0x130] sm:$0xff]  ;;  %v111_v59 = vld [vmem:[#allocation6 + $0x148] sm:$0xff] }
  0x46   :  { %1969 = vmatpush1.bf16.msra.mxu1 %v1968_v39  ;;  %1939 = vmatprep.subr.bf16.mxu0 %v1938_v40  ;;  %v115_v60 = vld [vmem:[#allocation6 + $0x168] sm:$0xff]  ;;  %v113_v61 = vld [vmem:[#allocation6 + $0x158] sm:$0xff]  ;;  %v1944_v63 = vpack.c.bf16 %v106_v55, %v102_v54  ;;  %v1976_v1 = vpack.c.bf16 %v108_v58, %v104_v56  ;;  %v110_v3 = vld [vmem:[#allocation6 + $0x140] sm:$0xff] }
  0x47   :  { %1971 = vmatprep.subr.bf16.mxu1 %v1970_v44  ;;  %v117_v62 = vld [vmem:[#allocation6 + $0x178] sm:$0xff]  ;;  %v1946_v2 = vpack.c.bf16 %v115_v60, %v111_v59  ;;  %v114_v4 = vld [vmem:[#allocation6 + $0x160] sm:$0xff]  ;;  %v112_v5 = vld [vmem:[#allocation6 + $0x150] sm:$0xff] }
  0x48   :  { %v1978_v6 = vpack.c.bf16 %v117_v62, %v113_v61  ;;  %v116_v7 = vld [vmem:[#allocation6 + $0x170] sm:$0xff]  ;;  %v119_v8 = vld [vmem:[#allocation6 + $0x188] sm:$0xff]  ;;  %v121_v10 = vld [vmem:[#allocation6 + $0x198] sm:$0xff]  ;;  %v1948_v12 = vpack.c.bf16 %v114_v4, %v110_v3 }
  0x49   :  { %1941 = vmatpush1.bf16.msra.mxu0 %v1940_v51  ;;  %v123_v9 = vld [vmem:[#allocation6 + $0x1a8] sm:$0xff]  ;;  %v125_v11 = vld [vmem:[#allocation6 + $0x1b8] sm:$0xff]  ;;  %v1980_v13 = vpack.c.bf16 %v116_v7, %v112_v5  ;;  %v118_v15 = vld [vmem:[#allocation6 + $0x180] sm:$0xff] }
  0x4a   :  { %1973 = vmatpush1.bf16.msra.mxu1 %v1972_v52  ;;  %1943 = vmatprep.subr.bf16.mxu0 %v1942_v53  ;;  %v1950_v14 = vpack.c.bf16 %v123_v9, %v119_v8  ;;  %v122_v16 = vld [vmem:[#allocation6 + $0x1a0] sm:$0xff]  ;;  %v120_v17 = vld [vmem:[#allocation6 + $0x190] sm:$0xff]  ;;  %v1982_v18 = vpack.c.bf16 %v125_v11, %v121_v10  ;;  %v127_v20 = vld [vmem:[#allocation6 + $0x1c8] sm:$0xff] }
  0x4b   :  { %1975 = vmatprep.subr.bf16.mxu1 %v1974_v57  ;;  %v124_v19 = vld [vmem:[#allocation6 + $0x1b0] sm:$0xff]  ;;  %v131_v21 = vld [vmem:[#allocation6 + $0x1e8] sm:$0xff]  ;;  %v129_v22 = vld [vmem:[#allocation6 + $0x1d8] sm:$0xff]  ;;  %v1952_v24 = vpack.c.bf16 %v122_v16, %v118_v15 }
  0x4c   :  { %v133_v23 = vld [vmem:[#allocation6 + $0x1f8] sm:$0xff]  ;;  %v1984_v25 = vpack.c.bf16 %v124_v19, %v120_v17  ;;  %v1954_v26 = vpack.c.bf16 %v131_v21, %v127_v20  ;;  %v126_v27 = vld [vmem:[#allocation6 + $0x1c0] sm:$0xff]  ;;  %v128_v29 = vld [vmem:[#allocation6 + $0x1d0] sm:$0xff] }
  0x4d   :  { %1945 = vmatpush1.bf16.msra.mxu0 %v1944_v63  ;;  %v130_v28 = vld [vmem:[#allocation6 + $0x1e0] sm:$0xff]  ;;  %v1986_v30 = vpack.c.bf16 %v133_v23, %v129_v22  ;;  %v132_v31 = vld [vmem:[#allocation6 + $0x1f0] sm:$0xff]  ;;  %v415_v32 = vld [vmem:[#allocation8 + $0x8] sm:$0xff] }
  0x4e   :  { %1977 = vmatpush1.bf16.msra.mxu1 %v1976_v1  ;;  %1947 = vmatprep.subr.bf16.mxu0 %v1946_v2  ;;  %v419_v33 = vld [vmem:[#allocation8 + $0x28] sm:$0xff]  ;;  %v417_v34 = vld [vmem:[#allocation8 + $0x18] sm:$0xff]  ;;  %v1956_v36 = vpack.c.bf16 %v130_v28, %v126_v27  ;;  %v1988_v37 = vpack.c.bf16 %v132_v31, %v128_v29  ;;  %v414_v39 = vld [vmem:[#allocation8] sm:$0xff] }
  0x4f   :  { %1979 = vmatprep.subr.bf16.mxu1 %v1978_v6  ;;  %v421_v35 = vld [vmem:[#allocation8 + $0x38] sm:$0xff]  ;;  %v2906_v38 = vpack.c.bf16 %v419_v33, %v415_v32  ;;  %v418_v40 = vld [vmem:[#allocation8 + $0x20] sm:$0xff]  ;;  %v416_v42 = vld [vmem:[#allocation8 + $0x10] sm:$0xff] }
  0x50   :  { %v2908_v41 = vpack.c.bf16 %v421_v35, %v417_v34  ;;  %v420_v43 = vld [vmem:[#allocation8 + $0x30] sm:$0xff]  ;;  %v423_v44 = vld [vmem:[#allocation8 + $0x48] sm:$0xff]  ;;  %v62_v46 = vld [vmem:[#allocation3] sm:$0xff]  ;;  %v2910_v47 = vpack.c.bf16 %v418_v40, %v414_v39 }
  0x51   :  { %1949 = vmatpush1.bf16.msra.mxu0 %v1948_v12  ;;  %v427_v45 = vld [vmem:[#allocation8 + $0x68] sm:$0xff]  ;;  %v425_v48 = vld [vmem:[#allocation8 + $0x58] sm:$0xff]  ;;  %v2913_v50 = vpack.c.bf16 %v420_v43, %v416_v42  ;;  %v422_v51 = vld [vmem:[#allocation8 + $0x40] sm:$0xff] }
  0x52   :  { %1981 = vmatpush1.bf16.msra.mxu1 %v1980_v13  ;;  %1951 = vmatprep.subr.bf16.mxu0 %v1950_v14  ;;  %v429_v49 = vld [vmem:[#allocation8 + $0x78] sm:$0xff]  ;;  %v426_v52 = vld [vmem:[#allocation8 + $0x60] sm:$0xff]  ;;  %v2916_v53 = vpack.c.bf16 %v427_v45, %v423_v44  ;;  %v424_v54 = vld [vmem:[#allocation8 + $0x50] sm:$0xff] }
  0x53   :  { %1983 = vmatprep.subr.bf16.mxu1 %v1982_v18  ;;  %v428_v55 = vld [vmem:[#allocation8 + $0x70] sm:$0xff]  ;;  %v2918_v56 = vpack.c.bf16 %v429_v49, %v425_v48  ;;  %v431_v57 = vld [vmem:[#allocation8 + $0x88] sm:$0xff]  ;;  %v2921_v60 = vpack.c.bf16 %v426_v52, %v422_v51  ;;  %v433_v61 = vld [vmem:[#allocation8 + $0x98] sm:$0xff] }
  0x54   :  { %v435_v58 = vld [vmem:[#allocation8 + $0xa8] sm:$0xff]  ;;  %v437_v62 = vld [vmem:[#allocation8 + $0xb8] sm:$0xff]  ;;  %v2925_v63 = vpack.c.bf16 %v428_v55, %v424_v54  ;;  %v430_v1 = vld [vmem:[#allocation8 + $0x80] sm:$0xff] }
  0x55   :  { %1953 = vmatpush1.bf16.msra.mxu0 %v1952_v24  ;;  %v63_v59 = vld [vmem:[#allocation3 + $0x8] sm:$0xff]  ;;  %v434_v2 = vld [vmem:[#allocation8 + $0xa0] sm:$0xff]  ;;  %v2929_v3 = vpack.c.bf16 %v435_v58, %v431_v57  ;;  %v432_v4 = vld [vmem:[#allocation8 + $0x90] sm:$0xff]  ;;  %v2932_v6 = vpack.c.bf16 %v437_v62, %v433_v61 }
  0x56   :  { %1985 = vmatpush1.bf16.msra.mxu1 %v1984_v25  ;;  %1955 = vmatprep.subr.bf16.mxu0 %v1954_v26  ;;  %v436_v5 = vld [vmem:[#allocation8 + $0xb0] sm:$0xff]  ;;  %v439_v7 = vld [vmem:[#allocation8 + $0xc8] sm:$0xff]  ;;  %v2935_v10 = vpack.c.bf16 %v434_v2, %v430_v1  ;;  %v441_v11 = vld [vmem:[#allocation8 + $0xd8] sm:$0xff] }
  0x57   :  { %1987 = vmatprep.subr.bf16.mxu1 %v1986_v30  ;;  %v443_v8 = vld [vmem:[#allocation8 + $0xe8] sm:$0xff]  ;;  %v64_v9 = vld [vmem:[#allocation3 + $0x10] sm:$0xff]  ;;  %v445_v12 = vld [vmem:[#allocation8 + $0xf8] sm:$0xff]  ;;  %v2939_v13 = vpack.c.bf16 %v436_v5, %v432_v4 }
  0x58   :  { %v438_v14 = vld [vmem:[#allocation8 + $0xc0] sm:$0xff]  ;;  %v2943_v16 = vpack.c.bf16 %v443_v8, %v439_v7  ;;  %v440_v17 = vld [vmem:[#allocation8 + $0xd0] sm:$0xff]  ;;  %v2946_v19 = vpack.c.bf16 %v445_v12, %v441_v11  ;;  %v447_v20 = vld [vmem:[#allocation8 + $0x108] sm:$0xff] }
  0x59   :  { %1957 = vmatpush1.bf16.msra.mxu0 %v1956_v36  ;;  %v442_v15 = vld [vmem:[#allocation8 + $0xe0] sm:$0xff]  ;;  %v444_v18 = vld [vmem:[#allocation8 + $0xf0] sm:$0xff]  ;;  %v451_v21 = vld [vmem:[#allocation8 + $0x128] sm:$0xff] }
  0x5a   :  { %1989 = vmatpush1.bf16.msra.mxu1 %v1988_v37  ;;  %1991 = vmatprep.subr.bf16.mxu0 %v2906_v38  ;;  %v65_v22 = vld [vmem:[#allocation3 + $0x18] sm:$0xff]  ;;  %v2949_v23 = vpack.c.bf16 %v442_v15, %v438_v14  ;;  %v2953_v26 = vpack.c.bf16 %v444_v18, %v440_v17  ;;  %v446_v27 = vld [vmem:[#allocation8 + $0x100] sm:$0xff]  ;;  %v2957_v29 = vpack.c.bf16 %v451_v21, %v447_v20  ;;  %v448_v30 = vld [vmem:[#allocation8 + $0x110] sm:$0xff] }
  0x5b   :  { %2023 = vmatprep.subr.bf16.mxu1 %v2908_v41  ;;  %v449_v24 = vld [vmem:[#allocation8 + $0x118] sm:$0xff]  ;;  %v450_v28 = vld [vmem:[#allocation8 + $0x120] sm:$0xff]  ;;  %v452_v31 = vld [vmem:[#allocation8 + $0x130] sm:$0xff] }
  0x5c   :  { %221 = vmatmul.mubr.f32.vlgmr.msra.gmra.mrb[0].mxu0 %v62_v46  ;;  %v453_v25 = vld [vmem:[#allocation8 + $0x138] sm:$0xff]  ;;  %v455_v33 = vld [vmem:[#allocation8 + $0x148] sm:$0xff]  ;;  %v66_v35 = vld [vmem:[#allocation3 + $0x20] sm:$0xff]  ;;  %v2963_v36 = vpack.c.bf16 %v450_v28, %v446_v27  ;;  %v2967_v40 = vpack.c.bf16 %v452_v31, %v448_v30  ;;  %v136_v28 = vlaneseq }
  0x5d   :  { %334 = vmatmul.mubr.f32.vlgmr.msra.gmra.mrb[0].mxu1 %v62_v46  ;;  %1993 = vmatpush1.bf16.msra.mxu0 %v2910_v47  ;;  %v2960_v32 = vpack.c.bf16 %v453_v25, %v449_v24  ;;  %v459_v34 = vld [vmem:[#allocation8 + $0x168] sm:$0xff]  ;;  %v457_v37 = vld [vmem:[#allocation8 + $0x158] sm:$0xff]  ;;  %v454_v42 = vld [vmem:[#allocation8 + $0x140] sm:$0xff] }
  0x5e   :  { %2025 = vmatpush1.bf16.msra.mxu1 %v2913_v50  ;;  %226 = vmatprep.mubr.f32.mxu0 %v2829_v0  ;;  %v461_v39 = vld [vmem:[#allocation8 + $0x178] sm:$0xff]  ;;  %v458_v43 = vld [vmem:[#allocation8 + $0x160] sm:$0xff]  ;;  %v2971_v44 = vpack.c.bf16 %v459_v34, %v455_v33  ;;  %v456_v45 = vld [vmem:[#allocation8 + $0x150] sm:$0xff]  ;;  %v137_v30 = vshrl.u32 %v136_v28, 7 }
  0x5f   :  { %339 = vmatprep.mubr.f32.mxu1 %v2829_v0  ;;  %1995 = vmatprep.subr.bf16.mxu0 %v2916_v53  ;;  %v460_v46 = vld [vmem:[#allocation8 + $0x170] sm:$0xff]  ;;  %v2974_v48 = vpack.c.bf16 %v461_v39, %v457_v37  ;;  %v463_v49 = vld [vmem:[#allocation8 + $0x188] sm:$0xff]  ;;  %v2977_v54 = vpack.c.bf16 %v458_v43, %v454_v42  ;;  %v465_v55 = vld [vmem:[#allocation8 + $0x198] sm:$0xff] }
  0x60   :  { %227 = vmatmul.mubr.f32.gmra.mrb[2].mxu0 %v63_v59  ;;  %2027 = vmatprep.subr.bf16.mxu1 %v2918_v56  ;;  %v467_v51 = vld [vmem:[#allocation8 + $0x1a8] sm:$0xff]  ;;  %v469_v57 = vld [vmem:[#allocation8 + $0x1b8] sm:$0xff]  ;;  %v2981_v58 = vpack.c.bf16 %v460_v46, %v456_v45  ;;  %v466_v61 = vld [vmem:[#allocation8 + $0x1a0] sm:$0xff]  ;;  %v138_v31 = vsub.s32 0, %v137_v30  ;;  %v142_v34 = vsub.s32 1, %v137_v30  ;;  %v150_v42 = vsub.s32 3, %v137_v30 }
  0x61   :  { %340 = vmatmul.mubr.f32.gmra.mrb[2].mxu1 %v63_v59  ;;  %1997 = vmatpush1.bf16.msra.mxu0 %v2921_v60  ;;  %v67_v52 = vld [vmem:[#allocation3 + $0x28] sm:$0xff]  ;;  %v462_v59 = vld [vmem:[#allocation8 + $0x180] sm:$0xff]  ;;  %v2985_v62 = vpack.c.bf16 %v467_v51, %v463_v49  ;;  %v464_v1 = vld [vmem:[#allocation8 + $0x190] sm:$0xff]  ;;  %v2988_v4 = vpack.c.bf16 %v469_v57, %v465_v55 }
  0x62   :  { %2029 = vmatpush1.bf16.msra.mxu1 %v2925_v63  ;;  %232 = vmatprep.mubr.f32.mxu0 %v2829_v0  ;;  %v468_v2 = vld [vmem:[#allocation8 + $0x1b0] sm:$0xff]  ;;  %v471_v5 = vld [vmem:[#allocation8 + $0x1c8] sm:$0xff]  ;;  %v473_v11 = vld [vmem:[#allocation8 + $0x1d8] sm:$0xff] }
  0x63   :  { %345 = vmatprep.mubr.f32.mxu1 %v2829_v0  ;;  %1999 = vmatprep.subr.bf16.mxu0 %v2929_v3  ;;  %v475_v7 = vld [vmem:[#allocation8 + $0x1e8] sm:$0xff]  ;;  %v68_v8 = vld [vmem:[#allocation3 + $0x30] sm:$0xff]  ;;  %v477_v12 = vld [vmem:[#allocation8 + $0x1f8] sm:$0xff]  ;;  %v2995_v14 = vpack.c.bf16 %v468_v2, %v464_v1 }
  0x64   :  { %233 = vmatmul.mubr.f32.gmra.mrb[4].mxu0 %v64_v9  ;;  %2031 = vmatprep.subr.bf16.mxu1 %v2932_v6  ;;  %v470_v15 = vld [vmem:[#allocation8 + $0x1c0] sm:$0xff]  ;;  %v2999_v18 = vpack.c.bf16 %v475_v7, %v471_v5  ;;  %v472_v20 = vld [vmem:[#allocation8 + $0x1d0] sm:$0xff]  ;;  %v69_v24 = vld [vmem:[#allocation3 + $0x38] sm:$0xff] }
  0x65   :  { %346 = vmatmul.mubr.f32.gmra.mrb[4].mxu1 %v64_v9  ;;  %2001 = vmatpush1.bf16.msra.mxu0 %v2935_v10  ;;  %v2991_v9 = vpack.c.bf16 %v466_v61, %v462_v59  ;;  %v474_v17 = vld [vmem:[#allocation8 + $0x1e0] sm:$0xff]  ;;  %v476_v21 = vld [vmem:[#allocation8 + $0x1f0] sm:$0xff]  ;;  %v146_v59 = vsub.s32 2, %v137_v30 }
  0x66   :  { %2033 = vmatpush1.bf16.msra.mxu1 %v2939_v13  ;;  %238 = vmatprep.mubr.f32.mxu0 %v2829_v0  ;;  %v3005_v25 = vpack.c.bf16 %v474_v17, %v470_v15  ;;  %v3009_v27 = vpack.c.bf16 %v476_v21, %v472_v20  ;;  %v134_v33 = vld [vmem:[%s3352_s3] sm:$0xf]  ;;  %s2830_s3 = smov [#allocation10]  }
  0x67   :  { %351 = vmatprep.mubr.f32.mxu1 %v2829_v0  ;;  %2003 = vmatprep.subr.bf16.mxu0 %v2943_v16  ;;  %v3061_v37 = vrot.slane %v134_v33, %v142_v34  ;;  %v3065_v57 = vrot.slane %v134_v33, %v150_v42  ;;  %v3068_v1 = vrot.slane %v134_v33, %v146_v59  ;;  %s1888_s29 = sshll.u32 %s2830_s3, 4  ;;  %s1889_s29 = int_to_ptr.vmem [resolvable:$true] %s1888_s29 }
  0x68   :  { %239 = vmatmul.mubr.f32.gmra.mrb[6].mxu0 %v65_v22  ;;  %2035 = vmatprep.subr.bf16.mxu1 %v2946_v19  ;;  %s2770_s8 = scalar_lea.vmem %s1889_s29, 128  ;;  %p2775_p11 = scmp.lt.s32.totalorder %s1889_s29, %s1889_s29 }
  0x69   :  { %352 = vmatmul.mubr.f32.gmra.mrb[6].mxu1 %v65_v22  ;;  %2005 = vmatpush1.bf16.msra.mxu0 %v2949_v23  ;;  %v3002_v22 = vpack.c.bf16 %v477_v12, %v473_v11  ;;  %p2771_p10 = scmp.ne.s32.totalorder %s1889_s29, %s2770_s8  ;;  %p2776_p12 = scmp.lt.s32.totalorder %s2770_s8, %s2770_s8 }
  0x6a   :  { %2037 = vmatpush1.bf16.msra.mxu1 %v2953_v26  ;;  %244 = vmatprep.mubr.f32.mxu0 %v2829_v0 }
  0x6b   :  { %357 = vmatprep.mubr.f32.mxu1 %v2829_v0  ;;  %2007 = vmatprep.subr.bf16.mxu0 %v2957_v29  ;;  %p2777_p13 = por %p2776_p12, %p2775_p11 }
  0x6c   :  { %245 = vmatmul.mubr.f32.gmra.mrb[8].mxu0 %v66_v35  ;;  %2039 = vmatprep.subr.bf16.mxu1 %v2960_v32 }
  0x6d   :  { %358 = vmatmul.mubr.f32.gmra.mrb[8].mxu1 %v66_v35  ;;  %2009 = vmatpush1.bf16.msra.mxu0 %v2963_v36  ;;  %v3059_v35 = vrot.slane %v134_v33, %v138_v31  ;;  %p2778_p0 = pnand %p2777_p13, %p2771_p10 }
  0x6e   :  { %2041 = vmatpush1.bf16.msra.mxu1 %v2967_v40  ;;  %250 = vmatprep.mubr.f32.mxu0 %v2829_v0 }
  0x6f   :  { %363 = vmatprep.mubr.f32.mxu1 %v2829_v0  ;;  %2011 = vmatprep.subr.bf16.mxu0 %v2971_v44 }
  0x70   :  { %251 = vmatmul.mubr.f32.gmra.mrb[10].mxu0 %v67_v52  ;;  %2043 = vmatprep.subr.bf16.mxu1 %v2974_v48 }
  0x71   :  { %364 = vmatmul.mubr.f32.gmra.mrb[10].mxu1 %v67_v52  ;;  %2013 = vmatpush1.bf16.msra.mxu0 %v2977_v54 }
  0x72   :  { %2045 = vmatpush1.bf16.msra.mxu1 %v2981_v58  ;;  %256 = vmatprep.mubr.f32.mxu0 %v2829_v0 }
  0x73   :  { %369 = vmatprep.mubr.f32.mxu1 %v2829_v0  ;;  %2015 = vmatprep.subr.bf16.mxu0 %v2985_v62 }
  0x74   :  { %257 = vmatmul.mubr.f32.gmra.mrb[12].mxu0 %v68_v8  ;;  %2047 = vmatprep.subr.bf16.mxu1 %v2988_v4 }
  0x75   :  { %370 = vmatmul.mubr.f32.gmra.mrb[12].mxu1 %v68_v8  ;;  %2017 = vmatpush1.bf16.msra.mxu0 %v2991_v9 }
  0x76   :  { %2049 = vmatpush1.bf16.msra.mxu1 %v2995_v14  ;;  %262 = vmatprep.mubr.f32.mxu0 %v2829_v0 }
  0x77   :  { %375 = vmatprep.mubr.f32.mxu1 %v2829_v0  ;;  %2019 = vmatprep.subr.bf16.mxu0 %v2999_v18 }
  0x78   :  { %263 = vmatmul.mubr.f32.gmra.mrb[14].mxu0 %v69_v24  ;;  %2051 = vmatprep.subr.bf16.mxu1 %v3002_v22 }
  0x79   :  { %376 = vmatmul.mubr.f32.gmra.mrb[14].mxu1 %v69_v24  ;;  %2021 = vmatpush1.bf16.msra.mxu0 %v3005_v25 }
  0x7a   :  { %2053 = vmatpush1.bf16.msra.mxu1 %v3009_v27  ;;  %546 = vmatprep.mubr.f32.mxu0 %v2829_v0 }
  0x7b   :  { %617 = vmatprep.mubr.f32.mxu1 %v2829_v0  ;;  %2055 = vmatprep.subr.bf16.mxu0 %v2906_v38 }
  0x7c   :  { %547 = vmatmul.mubr.f32.vlgmr.msra.gmra.mrb[0].mxu0 %v2829_v0  ;;  %2087 = vmatprep.subr.bf16.mxu1 %v2908_v41 }
  0x7d   :  { %618 = vmatmul.mubr.f32.vlgmr.msra.gmra.mrb[0].mxu1 %v2829_v0  ;;  %2057 = vmatpush1.bf16.msra.mxu0 %v2910_v47 }
  0x7e   :  { %2089 = vmatpush1.bf16.msra.mxu1 %v2913_v50  ;;  %2059 = vmatprep.subr.bf16.mxu0 %v2916_v53 }
  0x7f   :  { %2091 = vmatprep.subr.bf16.mxu1 %v2918_v56  ;;  %720 = vmatprep.mubr.f32.mxu0 %v2829_v0 }
  0x80   :  { %791 = vmatprep.mubr.f32.mxu1 %v2829_v0 }
  0x81   :  { %2061 = vmatpush1.bf16.msra.mxu0 %v2921_v60 }
  0x82   :  { %2093 = vmatpush1.bf16.msra.mxu1 %v2925_v63  ;;  %2063 = vmatprep.subr.bf16.mxu0 %v2929_v3 }
  0x83   :  { %2095 = vmatprep.subr.bf16.mxu1 %v2932_v6 }
  0x85   :  { %2065 = vmatpush1.bf16.msra.mxu0 %v2935_v10 }
  0x86   :  { %2097 = vmatpush1.bf16.msra.mxu1 %v2939_v13  ;;  %2067 = vmatprep.subr.bf16.mxu0 %v2943_v16 }
  0x87   :  { %2099 = vmatprep.subr.bf16.mxu1 %v2946_v19 }
  0x89   :  { %2069 = vmatpush1.bf16.msra.mxu0 %v2949_v23 }
  0x8a   :  { %2101 = vmatpush1.bf16.msra.mxu1 %v2953_v26  ;;  %2071 = vmatprep.subr.bf16.mxu0 %v2957_v29 }
  0x8b   :  { %2103 = vmatprep.subr.bf16.mxu1 %v2960_v32 }
  0x8d   :  { %2073 = vmatpush1.bf16.msra.mxu0 %v2963_v36 }
  0x8e   :  { %2105 = vmatpush1.bf16.msra.mxu1 %v2967_v40  ;;  %2075 = vmatprep.subr.bf16.mxu0 %v2971_v44 }
  0x8f   :  { %2107 = vmatprep.subr.bf16.mxu1 %v2974_v48 }
  0x91   :  { %2077 = vmatpush1.bf16.msra.mxu0 %v2977_v54 }
  0x92   :  { %2109 = vmatpush1.bf16.msra.mxu1 %v2981_v58  ;;  %2079 = vmatprep.subr.bf16.mxu0 %v2985_v62 }
  0x93   :  { %2111 = vmatprep.subr.bf16.mxu1 %v2988_v4 }
  0x95   :  { %2081 = vmatpush1.bf16.msra.mxu0 %v2991_v9 }
  0x96   :  { %2113 = vmatpush1.bf16.msra.mxu1 %v2995_v14  ;;  %2083 = vmatprep.subr.bf16.mxu0 %v2999_v18 }
  0x97   :  { %2115 = vmatprep.subr.bf16.mxu1 %v3002_v22 }
  0x99   :  { %2085 = vmatpush1.bf16.msra.mxu0 %v3005_v25 }
  0x9a   :  { %2117 = vmatpush1.bf16.msra.mxu1 %v3009_v27  ;;  %2119 = vmatprep.subr.bf16.mxu0 %v2906_v38 }
  0x9b   :  { %2151 = vmatprep.subr.bf16.mxu1 %v2908_v41 }
 0x14f   :  { %v548_v39 = vpop.f32.mrb[0].mxu0 }
 0x150   :  { %v2502_v43 = vadd.f32 %v548_v39, %v3059_v35  ;;  %v619_v45 = vpop.f32.mrb[0].mxu1  ;;  %v550_v46 = vpop.f32.mrb[1].mxu0 }
 0x151   :  { %v2503_v49 = vadd.f32 %v550_v46, %v3061_v37  ;;  %v621_v51 = vpop.f32.mrb[1].mxu1  ;;  %v2518_v5 = vadd.f32 %v619_v45, %v3068_v1 }
 0x152   :  { %v1902_v52 = vmul.f32 -1.442695, %v2502_v43  ;;  %v2519_v61 = vadd.f32 %v621_v51, %v3065_v57 }
 0x153   :  { %v1903_v55 = vmul.f32 -1.442695, %v2503_v49 }
 0x154   :  { %2576 = vpow2.f32 %v1902_v52  ;;  %v1904_v2 = vmul.f32 -1.442695, %v2519_v61 }
 0x155   :  { %2578 = vpow2.f32 %v1903_v55 }
 0x156   :  { %2580 = vpow2.f32 %v1904_v2 }
 0x157   :  { %2582 = vtanh.f32 %v2518_v5 }
 0x15e   :  { %v2577_v7 = vpop.eup %2576 }
 0x15f   :  { %v2579_v8 = vpop.eup %2578  ;;  %v631_v11 = vadd.f32 1.0, %v2577_v7 }
 0x160   :  { %v637_v12 = vadd.f32 1.0, %v2579_v8  ;;  %v2581_v15 = vpop.eup %2580 }
 0x161   :  { %2584 = vrcp.f32 %v631_v11  ;;  %v2583_v17 = vpop.eup %2582  ;;  %v644_v28 = vadd.f32 1.0, %v2581_v15 }
 0x162   :  { %2586 = vrcp.f32 %v637_v12 }
 0x163   :  { %2588 = vrcp.f32 %v644_v28 }
 0x16b   :  { %v2585_v20 = vpop.eup %2584 }
 0x16c   :  { %v2587_v21 = vpop.eup %2586  ;;  %v648_v24 = vmul.f32 %v2585_v20, %v2583_v17 }
 0x16d   :  { %v647_v30 = vmul.f32 0.0, %v2587_v21  ;;  %v2589_v33 = vpop.eup %2588 }
 0x16f   :  { %v3071_v31 = vadd.f32 %v648_v24, %v647_v30 }
 0x171   :  { %2590 = vtanh.f32 %v3071_v31 }
 0x17b   :  { %v2591_v34 = vpop.eup %2590 }
 0x17c   :  { %v651_v39 = vmul.f32 %v2591_v34, %v2589_v33 }
 0x17e   :  { %721 = vmatmul.mubr.f32.vlgmr.msra.gmra.mrb[2].mxu0 %v651_v39  ;;  %792 = vmatmul.mubr.f32.vlgmr.msra.gmra.mrb[2].mxu1 %v651_v39 }
 0x17f   :  { %2121 = vmatpush1.bf16.msra.mxu0 %v2910_v47  ;;  %2153 = vmatpush1.bf16.msra.mxu1 %v2913_v50 }
 0x180   :  { %2123 = vmatprep.subr.bf16.mxu0 %v2916_v53  ;;  %2155 = vmatprep.subr.bf16.mxu1 %v2918_v56 }
 0x181   :  { %894 = vmatprep.mubr.f32.mxu0 %v2829_v0  ;;  %965 = vmatprep.mubr.f32.mxu1 %v2829_v0 }
 0x183   :  { %2125 = vmatpush1.bf16.msra.mxu0 %v2921_v60  ;;  %2157 = vmatpush1.bf16.msra.mxu1 %v2925_v63 }
 0x184   :  { %2127 = vmatprep.subr.bf16.mxu0 %v2929_v3  ;;  %2159 = vmatprep.subr.bf16.mxu1 %v2932_v6 }
 0x187   :  { %2129 = vmatpush1.bf16.msra.mxu0 %v2935_v10  ;;  %2161 = vmatpush1.bf16.msra.mxu1 %v2939_v13 }
 0x188   :  { %2131 = vmatprep.subr.bf16.mxu0 %v2943_v16  ;;  %2163 = vmatprep.subr.bf16.mxu1 %v2946_v19 }
 0x18b   :  { %2133 = vmatpush1.bf16.msra.mxu0 %v2949_v23  ;;  %2165 = vmatpush1.bf16.msra.mxu1 %v2953_v26 }
 0x18c   :  { %2135 = vmatprep.subr.bf16.mxu0 %v2957_v29  ;;  %2167 = vmatprep.subr.bf16.mxu1 %v2960_v32 }
 0x18f   :  { %2137 = vmatpush1.bf16.msra.mxu0 %v2963_v36  ;;  %2169 = vmatpush1.bf16.msra.mxu1 %v2967_v40 }
 0x190   :  { %2139 = vmatprep.subr.bf16.mxu0 %v2971_v44  ;;  %2171 = vmatprep.subr.bf16.mxu1 %v2974_v48 }
 0x193   :  { %2141 = vmatpush1.bf16.msra.mxu0 %v2977_v54  ;;  %2173 = vmatpush1.bf16.msra.mxu1 %v2981_v58 }
 0x194   :  { %2143 = vmatprep.subr.bf16.mxu0 %v2985_v62  ;;  %2175 = vmatprep.subr.bf16.mxu1 %v2988_v4 }
 0x197   :  { %2145 = vmatpush1.bf16.msra.mxu0 %v2991_v9  ;;  %2177 = vmatpush1.bf16.msra.mxu1 %v2995_v14 }
 0x198   :  { %2147 = vmatprep.subr.bf16.mxu0 %v2999_v18  ;;  %2179 = vmatprep.subr.bf16.mxu1 %v3002_v22 }
 0x19b   :  { %2149 = vmatpush1.bf16.msra.mxu0 %v3005_v25  ;;  %2181 = vmatpush1.bf16.msra.mxu1 %v3009_v27 }
 0x19c   :  { %2183 = vmatprep.subr.bf16.mxu0 %v2906_v38  ;;  %2215 = vmatprep.subr.bf16.mxu1 %v2908_v41 }
 0x251   :  { %v722_v42 = vpop.f32.mrb[2].mxu0  ;;  %v793_v43 = vpop.f32.mrb[2].mxu1 }
 0x252   :  { %v2504_v45 = vadd.f32 %v722_v42, %v3059_v35  ;;  %v724_v46 = vpop.f32.mrb[3].mxu0  ;;  %v795_v49 = vpop.f32.mrb[3].mxu1  ;;  %v2520_v2 = vadd.f32 %v793_v43, %v3068_v1 }
 0x253   :  { %v2505_v51 = vadd.f32 %v724_v46, %v3061_v37  ;;  %v2521_v59 = vadd.f32 %v795_v49, %v3065_v57 }
 0x254   :  { %v1905_v52 = vmul.f32 -1.442695, %v2504_v45 }
 0x255   :  { %v1906_v55 = vmul.f32 -1.442695, %v2505_v51  ;;  %v1907_v61 = vmul.f32 -1.442695, %v2521_v59 }
 0x256   :  { %2592 = vpow2.f32 %v1905_v52 }
 0x257   :  { %2594 = vpow2.f32 %v1906_v55 }
 0x258   :  { %2596 = vpow2.f32 %v1907_v61 }
 0x259   :  { %2598 = vtanh.f32 %v2520_v2 }
 0x260   :  { %v2593_v5 = vpop.eup %2592 }
 0x261   :  { %v2595_v7 = vpop.eup %2594  ;;  %v805_v8 = vadd.f32 1.0, %v2593_v5 }
 0x262   :  { %v811_v11 = vadd.f32 1.0, %v2595_v7  ;;  %v2597_v12 = vpop.eup %2596 }
 0x263   :  { %2600 = vrcp.f32 %v805_v8  ;;  %v2599_v15 = vpop.eup %2598  ;;  %v818_v24 = vadd.f32 1.0, %v2597_v12 }
 0x264   :  { %2602 = vrcp.f32 %v811_v11 }
 0x265   :  { %2604 = vrcp.f32 %v818_v24 }
 0x26d   :  { %v2601_v17 = vpop.eup %2600 }
 0x26e   :  { %v2603_v20 = vpop.eup %2602  ;;  %v822_v21 = vmul.f32 %v2601_v17, %v2599_v15 }
 0x26f   :  { %v821_v28 = vmul.f32 %v2603_v20, %v3071_v31  ;;  %v2605_v33 = vpop.eup %2604 }
 0x271   :  { %v3113_v30 = vadd.f32 %v822_v21, %v821_v28 }
 0x273   :  { %2606 = vtanh.f32 %v3113_v30 }
 0x27d   :  { %v2607_v34 = vpop.eup %2606 }
 0x27e   :  { %v825_v39 = vmul.f32 %v2607_v34, %v2605_v33 }
 0x280   :  { %895 = vmatmul.mubr.f32.vlgmr.msra.gmra.mrb[4].mxu0 %v825_v39  ;;  %966 = vmatmul.mubr.f32.vlgmr.msra.gmra.mrb[4].mxu1 %v825_v39 }
 0x281   :  { %2185 = vmatpush1.bf16.msra.mxu0 %v2910_v47  ;;  %2217 = vmatpush1.bf16.msra.mxu1 %v2913_v50 }
 0x282   :  { %2187 = vmatprep.subr.bf16.mxu0 %v2916_v53  ;;  %2219 = vmatprep.subr.bf16.mxu1 %v2918_v56 }
 0x283   :  { %1068 = vmatprep.mubr.f32.mxu0 %v2829_v0  ;;  %1139 = vmatprep.mubr.f32.mxu1 %v2829_v0 }
 0x285   :  { %2189 = vmatpush1.bf16.msra.mxu0 %v2921_v60  ;;  %2221 = vmatpush1.bf16.msra.mxu1 %v2925_v63 }
 0x286   :  { %2191 = vmatprep.subr.bf16.mxu0 %v2929_v3  ;;  %2223 = vmatprep.subr.bf16.mxu1 %v2932_v6 }
 0x289   :  { %2193 = vmatpush1.bf16.msra.mxu0 %v2935_v10  ;;  %2225 = vmatpush1.bf16.msra.mxu1 %v2939_v13 }
 0x28a   :  { %2195 = vmatprep.subr.bf16.mxu0 %v2943_v16  ;;  %2227 = vmatprep.subr.bf16.mxu1 %v2946_v19 }
 0x28d   :  { %2197 = vmatpush1.bf16.msra.mxu0 %v2949_v23  ;;  %2229 = vmatpush1.bf16.msra.mxu1 %v2953_v26 }
 0x28e   :  { %2199 = vmatprep.subr.bf16.mxu0 %v2957_v29  ;;  %2231 = vmatprep.subr.bf16.mxu1 %v2960_v32 }
 0x291   :  { %2201 = vmatpush1.bf16.msra.mxu0 %v2963_v36  ;;  %2233 = vmatpush1.bf16.msra.mxu1 %v2967_v40 }
 0x292   :  { %2203 = vmatprep.subr.bf16.mxu0 %v2971_v44  ;;  %2235 = vmatprep.subr.bf16.mxu1 %v2974_v48 }
 0x295   :  { %2205 = vmatpush1.bf16.msra.mxu0 %v2977_v54  ;;  %2237 = vmatpush1.bf16.msra.mxu1 %v2981_v58 }
 0x296   :  { %2207 = vmatprep.subr.bf16.mxu0 %v2985_v62  ;;  %2239 = vmatprep.subr.bf16.mxu1 %v2988_v4 }
 0x299   :  { %2209 = vmatpush1.bf16.msra.mxu0 %v2991_v9  ;;  %2241 = vmatpush1.bf16.msra.mxu1 %v2995_v14 }
 0x29a   :  { %2211 = vmatprep.subr.bf16.mxu0 %v2999_v18  ;;  %2243 = vmatprep.subr.bf16.mxu1 %v3002_v22 }
 0x29d   :  { %2213 = vmatpush1.bf16.msra.mxu0 %v3005_v25  ;;  %2245 = vmatpush1.bf16.msra.mxu1 %v3009_v27 }
 0x29e   :  { %2247 = vmatprep.subr.bf16.mxu0 %v2906_v38  ;;  %2279 = vmatprep.subr.bf16.mxu1 %v2908_v41 }
 0x353   :  { %v896_v31 = vpop.f32.mrb[4].mxu0  ;;  %v967_v42 = vpop.f32.mrb[4].mxu1 }
 0x354   :  { %v2506_v43 = vadd.f32 %v896_v31, %v3059_v35  ;;  %v898_v45 = vpop.f32.mrb[5].mxu0  ;;  %v969_v46 = vpop.f32.mrb[5].mxu1  ;;  %v2522_v61 = vadd.f32 %v967_v42, %v3068_v1 }
 0x355   :  { %v2507_v49 = vadd.f32 %v898_v45, %v3061_v37  ;;  %v2523_v55 = vadd.f32 %v969_v46, %v3065_v57 }
 0x356   :  { %v1908_v51 = vmul.f32 -1.442695, %v2506_v43 }
 0x357   :  { %v1909_v52 = vmul.f32 -1.442695, %v2507_v49  ;;  %v1910_v59 = vmul.f32 -1.442695, %v2523_v55 }
 0x358   :  { %2608 = vpow2.f32 %v1908_v51 }
 0x359   :  { %2610 = vpow2.f32 %v1909_v52 }
 0x35a   :  { %2612 = vpow2.f32 %v1910_v59 }
 0x35b   :  { %2614 = vtanh.f32 %v2522_v61 }
 0x362   :  { %v2609_v2 = vpop.eup %2608 }
 0x363   :  { %v2611_v5 = vpop.eup %2610  ;;  %v979_v7 = vadd.f32 1.0, %v2609_v2 }
 0x364   :  { %v985_v8 = vadd.f32 1.0, %v2611_v5  ;;  %v2613_v11 = vpop.eup %2612 }
 0x365   :  { %2616 = vrcp.f32 %v979_v7  ;;  %v2615_v12 = vpop.eup %2614  ;;  %v992_v21 = vadd.f32 1.0, %v2613_v11 }
 0x366   :  { %2618 = vrcp.f32 %v985_v8 }
 0x367   :  { %2620 = vrcp.f32 %v992_v21 }
 0x36f   :  { %v2617_v15 = vpop.eup %2616 }
 0x370   :  { %v2619_v17 = vpop.eup %2618  ;;  %v996_v20 = vmul.f32 %v2617_v15, %v2615_v12 }
 0x371   :  { %v995_v24 = vmul.f32 %v2619_v17, %v3113_v30  ;;  %v2621_v33 = vpop.eup %2620 }
 0x373   :  { %v3155_v28 = vadd.f32 %v996_v20, %v995_v24 }
 0x375   :  { %2622 = vtanh.f32 %v3155_v28 }
 0x37f   :  { %v2623_v34 = vpop.eup %2622 }
 0x380   :  { %v999_v39 = vmul.f32 %v2623_v34, %v2621_v33 }
 0x382   :  { %1069 = vmatmul.mubr.f32.vlgmr.msra.gmra.mrb[6].mxu0 %v999_v39  ;;  %1140 = vmatmul.mubr.f32.vlgmr.msra.gmra.mrb[6].mxu1 %v999_v39 }
 0x383   :  { %2249 = vmatpush1.bf16.msra.mxu0 %v2910_v47  ;;  %2281 = vmatpush1.bf16.msra.mxu1 %v2913_v50 }
 0x384   :  { %2251 = vmatprep.subr.bf16.mxu0 %v2916_v53  ;;  %2283 = vmatprep.subr.bf16.mxu1 %v2918_v56 }
 0x385   :  { %1242 = vmatprep.mubr.f32.mxu0 %v2829_v0  ;;  %1313 = vmatprep.mubr.f32.mxu1 %v2829_v0 }
 0x387   :  { %2253 = vmatpush1.bf16.msra.mxu0 %v2921_v60  ;;  %2285 = vmatpush1.bf16.msra.mxu1 %v2925_v63 }
 0x388   :  { %2255 = vmatprep.subr.bf16.mxu0 %v2929_v3  ;;  %2287 = vmatprep.subr.bf16.mxu1 %v2932_v6 }
 0x38b   :  { %2257 = vmatpush1.bf16.msra.mxu0 %v2935_v10  ;;  %2289 = vmatpush1.bf16.msra.mxu1 %v2939_v13 }
 0x38c   :  { %2259 = vmatprep.subr.bf16.mxu0 %v2943_v16  ;;  %2291 = vmatprep.subr.bf16.mxu1 %v2946_v19 }
 0x38f   :  { %2261 = vmatpush1.bf16.msra.mxu0 %v2949_v23  ;;  %2293 = vmatpush1.bf16.msra.mxu1 %v2953_v26 }
 0x390   :  { %2263 = vmatprep.subr.bf16.mxu0 %v2957_v29  ;;  %2295 = vmatprep.subr.bf16.mxu1 %v2960_v32 }
 0x393   :  { %2265 = vmatpush1.bf16.msra.mxu0 %v2963_v36  ;;  %2297 = vmatpush1.bf16.msra.mxu1 %v2967_v40 }
 0x394   :  { %2267 = vmatprep.subr.bf16.mxu0 %v2971_v44  ;;  %2299 = vmatprep.subr.bf16.mxu1 %v2974_v48 }
 0x397   :  { %2269 = vmatpush1.bf16.msra.mxu0 %v2977_v54  ;;  %2301 = vmatpush1.bf16.msra.mxu1 %v2981_v58 }
 0x398   :  { %2271 = vmatprep.subr.bf16.mxu0 %v2985_v62  ;;  %2303 = vmatprep.subr.bf16.mxu1 %v2988_v4 }
 0x39b   :  { %2273 = vmatpush1.bf16.msra.mxu0 %v2991_v9  ;;  %2305 = vmatpush1.bf16.msra.mxu1 %v2995_v14 }
 0x39c   :  { %2275 = vmatprep.subr.bf16.mxu0 %v2999_v18  ;;  %2307 = vmatprep.subr.bf16.mxu1 %v3002_v22 }
 0x39f   :  { %2277 = vmatpush1.bf16.msra.mxu0 %v3005_v25  ;;  %2309 = vmatpush1.bf16.msra.mxu1 %v3009_v27 }
 0x3a0   :  { %2311 = vmatprep.subr.bf16.mxu0 %v2906_v38  ;;  %2343 = vmatprep.subr.bf16.mxu1 %v2908_v41 }
 0x455   :  { %v1070_v30 = vpop.f32.mrb[6].mxu0  ;;  %v1141_v31 = vpop.f32.mrb[6].mxu1 }
 0x456   :  { %v2508_v42 = vadd.f32 %v1070_v30, %v3059_v35  ;;  %v1072_v43 = vpop.f32.mrb[7].mxu0  ;;  %v1143_v45 = vpop.f32.mrb[7].mxu1  ;;  %v2524_v59 = vadd.f32 %v1141_v31, %v3068_v1 }
 0x457   :  { %v2509_v46 = vadd.f32 %v1072_v43, %v3061_v37  ;;  %v2525_v52 = vadd.f32 %v1143_v45, %v3065_v57 }
 0x458   :  { %v1911_v49 = vmul.f32 -1.442695, %v2508_v42 }
 0x459   :  { %v1912_v51 = vmul.f32 -1.442695, %v2509_v46  ;;  %v1913_v55 = vmul.f32 -1.442695, %v2525_v52 }
 0x45a   :  { %2624 = vpow2.f32 %v1911_v49 }
 0x45b   :  { %2626 = vpow2.f32 %v1912_v51 }
 0x45c   :  { %2628 = vpow2.f32 %v1913_v55 }
 0x45d   :  { %2630 = vtanh.f32 %v2524_v59 }
 0x464   :  { %v2625_v61 = vpop.eup %2624 }
 0x465   :  { %v2627_v2 = vpop.eup %2626  ;;  %v1153_v5 = vadd.f32 1.0, %v2625_v61 }
 0x466   :  { %v1159_v7 = vadd.f32 1.0, %v2627_v2  ;;  %v2629_v8 = vpop.eup %2628 }
 0x467   :  { %2632 = vrcp.f32 %v1153_v5  ;;  %v2631_v11 = vpop.eup %2630  ;;  %v1166_v20 = vadd.f32 1.0, %v2629_v8 }
 0x468   :  { %2634 = vrcp.f32 %v1159_v7 }
 0x469   :  { %2636 = vrcp.f32 %v1166_v20 }
 0x471   :  { %v2633_v12 = vpop.eup %2632 }
 0x472   :  { %v2635_v15 = vpop.eup %2634  ;;  %v1170_v17 = vmul.f32 %v2633_v12, %v2631_v11 }
 0x473   :  { %v1169_v21 = vmul.f32 %v2635_v15, %v3155_v28  ;;  %v2637_v33 = vpop.eup %2636 }
 0x475   :  { %v3197_v24 = vadd.f32 %v1170_v17, %v1169_v21 }
 0x477   :  { %2638 = vtanh.f32 %v3197_v24 }
 0x481   :  { %v2639_v34 = vpop.eup %2638 }
 0x482   :  { %v1173_v39 = vmul.f32 %v2639_v34, %v2637_v33 }
 0x484   :  { %1243 = vmatmul.mubr.f32.vlgmr.msra.gmra.mrb[8].mxu0 %v1173_v39  ;;  %1314 = vmatmul.mubr.f32.vlgmr.msra.gmra.mrb[8].mxu1 %v1173_v39 }
 0x485   :  { %2313 = vmatpush1.bf16.msra.mxu0 %v2910_v47  ;;  %2345 = vmatpush1.bf16.msra.mxu1 %v2913_v50 }
 0x486   :  { %2315 = vmatprep.subr.bf16.mxu0 %v2916_v53  ;;  %2347 = vmatprep.subr.bf16.mxu1 %v2918_v56 }
 0x487   :  { %1416 = vmatprep.mubr.f32.mxu0 %v2829_v0  ;;  %1487 = vmatprep.mubr.f32.mxu1 %v2829_v0 }
 0x489   :  { %2317 = vmatpush1.bf16.msra.mxu0 %v2921_v60  ;;  %2349 = vmatpush1.bf16.msra.mxu1 %v2925_v63 }
 0x48a   :  { %2319 = vmatprep.subr.bf16.mxu0 %v2929_v3  ;;  %2351 = vmatprep.subr.bf16.mxu1 %v2932_v6 }
 0x48d   :  { %2321 = vmatpush1.bf16.msra.mxu0 %v2935_v10  ;;  %2353 = vmatpush1.bf16.msra.mxu1 %v2939_v13 }
 0x48e   :  { %2323 = vmatprep.subr.bf16.mxu0 %v2943_v16  ;;  %2355 = vmatprep.subr.bf16.mxu1 %v2946_v19 }
 0x491   :  { %2325 = vmatpush1.bf16.msra.mxu0 %v2949_v23  ;;  %2357 = vmatpush1.bf16.msra.mxu1 %v2953_v26 }
 0x492   :  { %2327 = vmatprep.subr.bf16.mxu0 %v2957_v29  ;;  %2359 = vmatprep.subr.bf16.mxu1 %v2960_v32 }
 0x495   :  { %2329 = vmatpush1.bf16.msra.mxu0 %v2963_v36  ;;  %2361 = vmatpush1.bf16.msra.mxu1 %v2967_v40 }
 0x496   :  { %2331 = vmatprep.subr.bf16.mxu0 %v2971_v44  ;;  %2363 = vmatprep.subr.bf16.mxu1 %v2974_v48 }
 0x499   :  { %2333 = vmatpush1.bf16.msra.mxu0 %v2977_v54  ;;  %2365 = vmatpush1.bf16.msra.mxu1 %v2981_v58 }
 0x49a   :  { %2335 = vmatprep.subr.bf16.mxu0 %v2985_v62  ;;  %2367 = vmatprep.subr.bf16.mxu1 %v2988_v4 }
 0x49d   :  { %2337 = vmatpush1.bf16.msra.mxu0 %v2991_v9  ;;  %2369 = vmatpush1.bf16.msra.mxu1 %v2995_v14 }
 0x49e   :  { %2339 = vmatprep.subr.bf16.mxu0 %v2999_v18  ;;  %2371 = vmatprep.subr.bf16.mxu1 %v3002_v22 }
 0x4a1   :  { %2341 = vmatpush1.bf16.msra.mxu0 %v3005_v25  ;;  %2373 = vmatpush1.bf16.msra.mxu1 %v3009_v27 }
 0x4a2   :  { %2375 = vmatprep.subr.bf16.mxu0 %v2906_v38  ;;  %2407 = vmatprep.subr.bf16.mxu1 %v2908_v41 }
 0x557   :  { %v1244_v28 = vpop.f32.mrb[8].mxu0  ;;  %v1315_v30 = vpop.f32.mrb[8].mxu1 }
 0x558   :  { %v2510_v31 = vadd.f32 %v1244_v28, %v3059_v35  ;;  %v1246_v42 = vpop.f32.mrb[9].mxu0  ;;  %v1317_v43 = vpop.f32.mrb[9].mxu1  ;;  %v2526_v55 = vadd.f32 %v1315_v30, %v3068_v1 }
 0x559   :  { %v2511_v45 = vadd.f32 %v1246_v42, %v3061_v37  ;;  %v2527_v51 = vadd.f32 %v1317_v43, %v3065_v57 }
 0x55a   :  { %v1914_v46 = vmul.f32 -1.442695, %v2510_v31 }
 0x55b   :  { %v1915_v49 = vmul.f32 -1.442695, %v2511_v45  ;;  %v1916_v52 = vmul.f32 -1.442695, %v2527_v51 }
 0x55c   :  { %2640 = vpow2.f32 %v1914_v46 }
 0x55d   :  { %2642 = vpow2.f32 %v1915_v49 }
 0x55e   :  { %2644 = vpow2.f32 %v1916_v52 }
 0x55f   :  { %2646 = vtanh.f32 %v2526_v55 }
 0x566   :  { %v2641_v59 = vpop.eup %2640 }
 0x567   :  { %v2643_v61 = vpop.eup %2642  ;;  %v1327_v2 = vadd.f32 1.0, %v2641_v59 }
 0x568   :  { %v1333_v5 = vadd.f32 1.0, %v2643_v61  ;;  %v2645_v7 = vpop.eup %2644 }
 0x569   :  { %2648 = vrcp.f32 %v1327_v2  ;;  %v2647_v8 = vpop.eup %2646  ;;  %v1340_v17 = vadd.f32 1.0, %v2645_v7 }
 0x56a   :  { %2650 = vrcp.f32 %v1333_v5 }
 0x56b   :  { %2652 = vrcp.f32 %v1340_v17 }
 0x573   :  { %v2649_v11 = vpop.eup %2648 }
 0x574   :  { %v2651_v12 = vpop.eup %2650  ;;  %v1344_v15 = vmul.f32 %v2649_v11, %v2647_v8 }
 0x575   :  { %v1343_v20 = vmul.f32 %v2651_v12, %v3197_v24  ;;  %v2653_v33 = vpop.eup %2652 }
 0x577   :  { %v3239_v21 = vadd.f32 %v1344_v15, %v1343_v20 }
 0x579   :  { %2654 = vtanh.f32 %v3239_v21 }
 0x583   :  { %v2655_v34 = vpop.eup %2654 }
 0x584   :  { %v1347_v39 = vmul.f32 %v2655_v34, %v2653_v33 }
 0x586   :  { %1417 = vmatmul.mubr.f32.vlgmr.msra.gmra.mrb[10].mxu0 %v1347_v39  ;;  %1488 = vmatmul.mubr.f32.vlgmr.msra.gmra.mrb[10].mxu1 %v1347_v39 }
 0x587   :  { %2377 = vmatpush1.bf16.msra.mxu0 %v2910_v47  ;;  %2409 = vmatpush1.bf16.msra.mxu1 %v2913_v50 }
 0x588   :  { %2379 = vmatprep.subr.bf16.mxu0 %v2916_v53  ;;  %2411 = vmatprep.subr.bf16.mxu1 %v2918_v56 }
 0x589   :  { %1590 = vmatprep.mubr.f32.mxu0 %v2829_v0  ;;  %1661 = vmatprep.mubr.f32.mxu1 %v2829_v0 }
 0x58b   :  { %2381 = vmatpush1.bf16.msra.mxu0 %v2921_v60  ;;  %2413 = vmatpush1.bf16.msra.mxu1 %v2925_v63 }
 0x58c   :  { %2383 = vmatprep.subr.bf16.mxu0 %v2929_v3  ;;  %2415 = vmatprep.subr.bf16.mxu1 %v2932_v6 }
 0x58f   :  { %2385 = vmatpush1.bf16.msra.mxu0 %v2935_v10  ;;  %2417 = vmatpush1.bf16.msra.mxu1 %v2939_v13 }
 0x590   :  { %2387 = vmatprep.subr.bf16.mxu0 %v2943_v16  ;;  %2419 = vmatprep.subr.bf16.mxu1 %v2946_v19 }
 0x593   :  { %2389 = vmatpush1.bf16.msra.mxu0 %v2949_v23  ;;  %2421 = vmatpush1.bf16.msra.mxu1 %v2953_v26 }
 0x594   :  { %2391 = vmatprep.subr.bf16.mxu0 %v2957_v29  ;;  %2423 = vmatprep.subr.bf16.mxu1 %v2960_v32 }
 0x597   :  { %2393 = vmatpush1.bf16.msra.mxu0 %v2963_v36  ;;  %2425 = vmatpush1.bf16.msra.mxu1 %v2967_v40 }
 0x598   :  { %2395 = vmatprep.subr.bf16.mxu0 %v2971_v44  ;;  %2427 = vmatprep.subr.bf16.mxu1 %v2974_v48 }
 0x59b   :  { %2397 = vmatpush1.bf16.msra.mxu0 %v2977_v54  ;;  %2429 = vmatpush1.bf16.msra.mxu1 %v2981_v58 }
 0x59c   :  { %2399 = vmatprep.subr.bf16.mxu0 %v2985_v62  ;;  %2431 = vmatprep.subr.bf16.mxu1 %v2988_v4 }
 0x59f   :  { %2401 = vmatpush1.bf16.msra.mxu0 %v2991_v9  ;;  %2433 = vmatpush1.bf16.msra.mxu1 %v2995_v14 }
 0x5a0   :  { %2403 = vmatprep.subr.bf16.mxu0 %v2999_v18  ;;  %2435 = vmatprep.subr.bf16.mxu1 %v3002_v22 }
 0x5a3   :  { %2405 = vmatpush1.bf16.msra.mxu0 %v3005_v25  ;;  %2437 = vmatpush1.bf16.msra.mxu1 %v3009_v27 }
 0x5a4   :  { %2439 = vmatprep.subr.bf16.mxu0 %v2906_v38  ;;  %2471 = vmatprep.subr.bf16.mxu1 %v2908_v41 }
 0x659   :  { %v1418_v24 = vpop.f32.mrb[10].mxu0  ;;  %v1489_v28 = vpop.f32.mrb[10].mxu1 }
 0x65a   :  { %v2512_v30 = vadd.f32 %v1418_v24, %v3059_v35  ;;  %v1420_v31 = vpop.f32.mrb[11].mxu0  ;;  %v1491_v42 = vpop.f32.mrb[11].mxu1  ;;  %v2528_v52 = vadd.f32 %v1489_v28, %v3068_v1 }
 0x65b   :  { %v2513_v43 = vadd.f32 %v1420_v31, %v3061_v37  ;;  %v2529_v49 = vadd.f32 %v1491_v42, %v3065_v57 }
 0x65c   :  { %v1917_v45 = vmul.f32 -1.442695, %v2512_v30 }
 0x65d   :  { %v1918_v46 = vmul.f32 -1.442695, %v2513_v43  ;;  %v1919_v51 = vmul.f32 -1.442695, %v2529_v49 }
 0x65e   :  { %2656 = vpow2.f32 %v1917_v45 }
 0x65f   :  { %2658 = vpow2.f32 %v1918_v46 }
 0x660   :  { %2660 = vpow2.f32 %v1919_v51 }
 0x661   :  { %2662 = vtanh.f32 %v2528_v52 }
 0x668   :  { %v2657_v38 = vpop.eup %2656 }
 0x669   :  { %v2659_v55 = vpop.eup %2658  ;;  %v1501_v41 = vadd.f32 1.0, %v2657_v38 }
 0x66a   :  { %v1507_v59 = vadd.f32 1.0, %v2659_v55  ;;  %v2661_v61 = vpop.eup %2660 }
 0x66b   :  { %2664 = vrcp.f32 %v1501_v41  ;;  %v2663_v2 = vpop.eup %2662  ;;  %v1514_v11 = vadd.f32 1.0, %v2661_v61 }
 0x66c   :  { %2666 = vrcp.f32 %v1507_v59 }
 0x66d   :  { %2668 = vrcp.f32 %v1514_v11 }
 0x675   :  { %v2665_v5 = vpop.eup %2664 }
 0x676   :  { %v2667_v7 = vpop.eup %2666  ;;  %v1518_v8 = vmul.f32 %v2665_v5, %v2663_v2 }
 0x677   :  { %v1517_v12 = vmul.f32 %v2667_v7, %v3239_v21  ;;  %v2669_v17 = vpop.eup %2668 }
 0x679   :  { %v3281_v15 = vadd.f32 %v1518_v8, %v1517_v12 }
 0x67b   :  { %2670 = vtanh.f32 %v3281_v15 }
 0x685   :  { %v2671_v20 = vpop.eup %2670 }
 0x686   :  { %v1521_v33 = vmul.f32 %v2671_v20, %v2669_v17 }
 0x688   :  { %1591 = vmatmul.mubr.f32.vlgmr.msra.gmra.mrb[12].mxu0 %v1521_v33  ;;  %1662 = vmatmul.mubr.f32.vlgmr.msra.gmra.mrb[12].mxu1 %v1521_v33 }
 0x689   :  { %2441 = vmatpush1.bf16.msra.mxu0 %v2910_v47  ;;  %2473 = vmatpush1.bf16.msra.mxu1 %v2913_v50 }
 0x68a   :  { %2443 = vmatprep.subr.bf16.mxu0 %v2916_v53  ;;  %2475 = vmatprep.subr.bf16.mxu1 %v2918_v56 }
 0x68b   :  { %1764 = vmatprep.mubr.f32.mxu0 %v2829_v0  ;;  %1835 = vmatprep.mubr.f32.mxu1 %v2829_v0 }
 0x68d   :  { %2445 = vmatpush1.bf16.msra.mxu0 %v2921_v60  ;;  %2477 = vmatpush1.bf16.msra.mxu1 %v2925_v63 }
 0x68e   :  { %2447 = vmatprep.subr.bf16.mxu0 %v2929_v3  ;;  %2479 = vmatprep.subr.bf16.mxu1 %v2932_v6 }
 0x691   :  { %2449 = vmatpush1.bf16.msra.mxu0 %v2935_v10  ;;  %2481 = vmatpush1.bf16.msra.mxu1 %v2939_v13 }
 0x692   :  { %2451 = vmatprep.subr.bf16.mxu0 %v2943_v16  ;;  %2483 = vmatprep.subr.bf16.mxu1 %v2946_v19 }
 0x695   :  { %2453 = vmatpush1.bf16.msra.mxu0 %v2949_v23  ;;  %2485 = vmatpush1.bf16.msra.mxu1 %v2953_v26 }
 0x696   :  { %2455 = vmatprep.subr.bf16.mxu0 %v2957_v29  ;;  %2487 = vmatprep.subr.bf16.mxu1 %v2960_v32 }
 0x699   :  { %2457 = vmatpush1.bf16.msra.mxu0 %v2963_v36  ;;  %2489 = vmatpush1.bf16.msra.mxu1 %v2967_v40 }
 0x69a   :  { %2459 = vmatprep.subr.bf16.mxu0 %v2971_v44  ;;  %2491 = vmatprep.subr.bf16.mxu1 %v2974_v48 }
 0x69d   :  { %2461 = vmatpush1.bf16.msra.mxu0 %v2977_v54  ;;  %2493 = vmatpush1.bf16.msra.mxu1 %v2981_v58 }
 0x69e   :  { %2463 = vmatprep.subr.bf16.mxu0 %v2985_v62  ;;  %2495 = vmatprep.subr.bf16.mxu1 %v2988_v4 }
 0x6a1   :  { %2465 = vmatpush1.bf16.msra.mxu0 %v2991_v9  ;;  %2497 = vmatpush1.bf16.msra.mxu1 %v2995_v14 }
 0x6a2   :  { %2467 = vmatprep.subr.bf16.mxu0 %v2999_v18  ;;  %2499 = vmatprep.subr.bf16.mxu1 %v3002_v22 }
 0x6a5   :  { %2469 = vmatpush1.bf16.msra.mxu0 %v3005_v25  ;;  %2501 = vmatpush1.bf16.msra.mxu1 %v3009_v27 }
 0x75b   :  { %v1592_v0 = vpop.f32.mrb[12].mxu0  ;;  %v1663_v47 = vpop.f32.mrb[12].mxu1 }
 0x75c   :  { %v2514_v50 = vadd.f32 %v1592_v0, %v3059_v35  ;;  %v1594_v53 = vpop.f32.mrb[13].mxu0  ;;  %v1665_v56 = vpop.f32.mrb[13].mxu1  ;;  %v2530_v13 = vadd.f32 %v1663_v47, %v3068_v1 }
 0x75d   :  { %v2515_v60 = vadd.f32 %v1594_v53, %v3061_v37  ;;  %v2531_v6 = vadd.f32 %v1665_v56, %v3065_v57 }
 0x75e   :  { %v1920_v63 = vmul.f32 -1.442695, %v2514_v50 }
 0x75f   :  { %v1921_v3 = vmul.f32 -1.442695, %v2515_v60  ;;  %v1922_v10 = vmul.f32 -1.442695, %v2531_v6 }
 0x760   :  { %2672 = vpow2.f32 %v1920_v63 }
 0x761   :  { %2674 = vpow2.f32 %v1921_v3 }
 0x762   :  { %2676 = vpow2.f32 %v1922_v10 }
 0x763   :  { %2678 = vtanh.f32 %v2530_v13 }
 0x76a   :  { %v2673_v16 = vpop.eup %2672 }
 0x76b   :  { %v2675_v19 = vpop.eup %2674  ;;  %v1675_v23 = vadd.f32 1.0, %v2673_v16 }
 0x76c   :  { %v1681_v26 = vadd.f32 1.0, %v2675_v19  ;;  %v2677_v29 = vpop.eup %2676 }
 0x76d   :  { %2680 = vrcp.f32 %v1675_v23  ;;  %v2679_v32 = vpop.eup %2678  ;;  %v1688_v48 = vadd.f32 1.0, %v2677_v29 }
 0x76e   :  { %2682 = vrcp.f32 %v1681_v26 }
 0x76f   :  { %2684 = vrcp.f32 %v1688_v48 }
 0x777   :  { %v2681_v36 = vpop.eup %2680 }
 0x778   :  { %v2683_v40 = vpop.eup %2682  ;;  %v1692_v44 = vmul.f32 %v2681_v36, %v2679_v32 }
 0x779   :  { %v1691_v54 = vmul.f32 %v2683_v40, %v3281_v15  ;;  %v2685_v62 = vpop.eup %2684 }
 0x77b   :  { %v1693_v58 = vadd.f32 %v1692_v44, %v1691_v54 }
 0x77d   :  { %2686 = vtanh.f32 %v1693_v58 }
 0x787   :  { %v2687_v4 = vpop.eup %2686 }
 0x788   :  { %v1695_v9 = vmul.f32 %v2687_v4, %v2685_v62 }
 0x78a   :  { %1765 = vmatmul.mubr.f32.vlgmr.msra.gmra.mrb[14].mxu0 %v1695_v9  ;;  %1836 = vmatmul.mubr.f32.vlgmr.msra.gmra.mrb[14].mxu1 %v1695_v9 }
 0x85d   :  { %v1766_v14 = vpop.f32.mrb[14].mxu0  ;;  %v1837_v18 = vpop.f32.mrb[14].mxu1 }
 0x85e   :  { %v2516_v22 = vadd.f32 %v1766_v14, %v3059_v35  ;;  %v1768_v25 = vpop.f32.mrb[15].mxu0  ;;  %v1839_v27 = vpop.f32.mrb[15].mxu1  ;;  %v2532_v30 = vadd.f32 %v1837_v18, %v3068_v1 }
 0x85f   :  { %v2517_v21 = vadd.f32 %v1768_v25, %v3061_v37  ;;  %v2533_v24 = vadd.f32 %v1839_v27, %v3065_v57 }
 0x860   :  { %v1923_v34 = vmul.f32 -1.442695, %v2516_v22 }
 0x861   :  { %v1924_v39 = vmul.f32 -1.442695, %v2517_v21  ;;  %v1925_v28 = vmul.f32 -1.442695, %v2533_v24 }
 0x862   :  { %2688 = vpow2.f32 %v1923_v34 }
 0x863   :  { %2690 = vpow2.f32 %v1924_v39 }
 0x864   :  { %2692 = vpow2.f32 %v1925_v28 }
 0x865   :  { %2694 = vtanh.f32 %v2532_v30 }
 0x86c   :  { %v2689_v31 = vpop.eup %2688 }
 0x86d   :  { %v2691_v42 = vpop.eup %2690  ;;  %v1849_v43 = vadd.f32 1.0, %v2689_v31 }
 0x86e   :  { %v1855_v45 = vadd.f32 1.0, %v2691_v42  ;;  %v2693_v35 = vpop.eup %2692 }
 0x86f   :  { %2696 = vrcp.f32 %v1849_v43  ;;  %v2695_v46 = vpop.eup %2694  ;;  %v1862_v52 = vadd.f32 1.0, %v2693_v35 }
 0x870   :  { %2698 = vrcp.f32 %v1855_v45 }
 0x871   :  { %2700 = vrcp.f32 %v1862_v52 }
 0x879   :  { %v2697_v37 = vpop.eup %2696 }
 0x87a   :  { %v2699_v49 = vpop.eup %2698  ;;  %v1866_v51 = vmul.f32 %v2697_v37, %v2695_v46 }
 0x87b   :  { %v1865_v57 = vmul.f32 %v2699_v49, %v1693_v58 }
 0x87d   :  { %v1867_v38 = vadd.f32 %v1866_v51, %v1865_v57 }
 0x87f   :  { %2702 = vtanh.f32 %v1867_v38  ;;  %1871 = vst [vmem:[#allocation10] sm:$0xff] %v1867_v38 }
 0x880   :  { %2781 = shalt.err (!%p2778_p0)
}
 0x881   :  { %s2782_s11 = scalar_lea.hbm %s3354_s5, 128 }
 0x882   :  { %p2783_p1 = scmp.ne.s32.totalorder %s3354_s5, %s2782_s11  ;;  %p2786_p2 = scmp.lt.u32.totalorder %s2782_s11, %s3354_s5 }
 0x884   :  { %p2788_p3 = pnand %p2786_p2, %p2783_p1 }
 0x886   :  { %2791 = shalt.err (!%p2788_p3)
}
 0x887   :  { %1891 = dma.vmem_to_hbm [thread:$0]  %s1889_s29, 128, %s3354_s5, [#allocation11]   ;;  %v2701_v1 = vpop.eup %2700 }
 0x888   :  { %s2831_s17 = smov [#allocation9]  }
 0x889   :  { %s1878_s18 = sshll.u32 %s2831_s17, 4  ;;  %v2703_v55 = vpop.eup %2702  ;;  %s1879_s18 = int_to_ptr.vmem [resolvable:$true] %s1878_s18 }
 0x88a   :  { %v1869_v41 = vmul.f32 %v2703_v55, %v2701_v1  ;;  %s2792_s19 = scalar_lea.vmem %s1879_s18, 128  ;;  %p2797_p5 = scmp.lt.s32.totalorder %s1879_s18, %s1879_s18 }
 0x88b   :  { %p2793_p4 = scmp.ne.s32.totalorder %s1879_s18, %s2792_s19  ;;  %p2798_p6 = scmp.lt.s32.totalorder %s2792_s19, %s2792_s19 }
 0x88c   :  { %1870 = vst [vmem:[#allocation9] sm:$0xff] %v1869_v41 }
 0x88d   :  { %p2799_p7 = por %p2798_p6, %p2797_p5 }
 0x88f   :  { %p2800_p8 = pnand %p2799_p7, %p2793_p4 }
 0x891   :  { %2803 = shalt.err (!%p2800_p8)
}
 0x892   :  { %s2804_s22 = scalar_lea.hbm %s3353_s4, 128 }
 0x893   :  { %p2805_p9 = scmp.ne.s32.totalorder %s3353_s4, %s2804_s22  ;;  %p2808_p10 = scmp.lt.u32.totalorder %s2804_s22, %s3353_s4 }
 0x895   :  { %p2810_p11 = pnand %p2808_p10, %p2805_p9 }
 0x897   :  { %2813 = shalt.err (!%p2810_p11)
}
 0x898   :  { %1881 = dma.vmem_to_hbm [thread:$0]  %s1879_s18, 128, %s3353_s4, [#allocation5]  }
 0x899   :  { %2818 = dma.done.wait [#allocation5], 128  }
 0x89a   :  { %2819 = vsyncadd [#allocation5], 4294967168 }
 0x89b   :  { %2820 = dma.done.wait [#allocation11], 128  }
 0x89c   :  { %2821 = vsyncadd [#allocation11], 4294967168 }
 0x89d   :  { %1898 = vsyncpa [#allocation4], 1 }
 0x89e   :  { %1899 = vsyncpa [#allocation7], 1 }
 0x89f   :  { %1900 = vsyncpa [#allocation5], 1 }
 0x8a0   :  { %1901 = vsyncpa [#allocation11], 1 }

</bundles_post_ra>
